<compile_context>
chip_gen: v7x
topology: tpu7x:2x2x1
jax: 0.10.0
libtpu: 0.0.40
codegen_flags: <defaults>
</compile_context>

<pallas_src>
import functools

import jax
import jax.numpy as jnp
from jax import lax
from jax.experimental import pallas as pl
from jax.experimental.pallas import tpu as pltpu

# Small, shape-consistent config (n_embd divisible by n_heads, T <= block_size).
N_EMBD = 48
N_HEADS = 6
HEAD_SIZE = N_EMBD // N_HEADS
N_LAYER = 6
SEQ_LEN = 16
BATCH = 2
BLOCK_SIZE = 32          # positional-embedding table size (T <= BLOCK_SIZE)
VOCAB = 65
LN_EPS = 1e-5
NEG_INF = -1e30          # finite mask value: exp(NEG_INF - rowmax) == 0, no NaN risk


def _layernorm(x, gamma, beta):
    # PyTorch LayerNorm: biased variance, eps inside the sqrt.
    mu = jnp.mean(x, axis=-1, keepdims=True)
    var = jnp.mean((x - mu) ** 2, axis=-1, keepdims=True)
    return (x - mu) * lax.rsqrt(var + LN_EPS) * gamma + beta


def bigram_stack_kernel(x_ref, maskb_ref,
                        wqkv_ref, wo_ref, bo_ref,
                        w1_ref, b1_ref, w2_ref, b2_ref,
                        g1_ref, be1_ref, g2_ref, be2_ref,
                        gf_ref, bef_ref, wlm_ref, blm_ref,
                        logits_ref, x_carry, *, n_heads):
    l = pl.program_id(0)

    # Layer 0: load the embedding activations into the resident carry buffer.
    @pl.when(l == 0)
    def _():
        x_carry[...] = x_ref[...]

    x = x_carry[...]                       # (B*T, C): batch folded into rows
    BT, C = x.shape
    D = C // n_heads
    mask_bias = maskb_ref[...]             # (BT, BT) additive block-diag causal mask

    # ---------------- self-attention branch ----------------
    h1 = _layernorm(x, g1_ref[...], be1_ref[...])
    # Single lane-dense QKV matmul; attention scale C**-0.5 already folded into
    # the Q columns wrapper-side.  Columns: [Q(0:C) | K(C:2C) | V(2C:3C)].
    qkv = jnp.dot(h1, wqkv_ref[...], preferred_element_type=jnp.float32)   # (BT, 3C)

    o_heads = []
    for h in range(n_heads):               # tiny static unroll; one head live at a time
        qh = qkv[:, h * D:(h + 1) * D]                 # lazy lane slices, no copies
        kh = qkv[:, C + h * D:C + (h + 1) * D]
        vh = qkv[:, 2 * C + h * D:2 * C + (h + 1) * D]
        s = lax.dot_general(qh, kh, (((1,), (1,)), ((), ())),
                            preferred_element_type=jnp.float32)            # (BT, BT)
        s = s + mask_bias
        s = s - jnp.max(s, axis=-1, keepdims=True)
        p = jnp.exp(s)
        p = p * pl.reciprocal(jnp.sum(p, axis=-1, keepdims=True), approx=False)
        # attention dropout (p=0.2): identity in eval mode
        o_heads.append(jnp.dot(p, vh, preferred_element_type=jnp.float32))  # (BT, D)

    o = jnp.concatenate(o_heads, axis=-1)                                   # (BT, C)
    # Head-sum done inside this single MXU contraction (one push, K=C).
    sa = jnp.dot(o, wo_ref[...], preferred_element_type=jnp.float32) + bo_ref[...]
    # projection dropout: identity in eval mode
    x1 = x + sa

    # ---------------- feed-forward branch ----------------
    h2 = _layernorm(x1, g2_ref[...], be2_ref[...])
    ff = jnp.dot(h2, w1_ref[...], preferred_element_type=jnp.float32) + b1_ref[...]
    ff = jnp.maximum(ff, 0.0)
    ff = jnp.dot(ff, w2_ref[...], preferred_element_type=jnp.float32) + b2_ref[...]
    # ffwd dropout: identity in eval mode
    x2 = x1 + ff
    x_carry[...] = x2                      # residual stream stays resident in VMEM

    # Final LayerNorm + lm_head fused into the last layer step.
    @pl.when(l == pl.num_programs(0) - 1)
    def _():
        hf = _layernorm(x2, gf_ref[...], bef_ref[...])
        logits_ref[...] = (
            jnp.dot(hf, wlm_ref[...], preferred_element_type=jnp.float32)
            + blm_ref[...]).astype(logits_ref.dtype)


def bigram_forward(idx, params):
    """Full BigramLM forward (eval mode): idx (B, T) int32 -> logits (B, T, V)."""
    B, T = idx.shape
    C = N_EMBD
    BT = B * T
    H4 = 4 * C
    L = N_LAYER
    V = params["w_lm"].shape[-1]
    scale = C ** (-0.5)        # NOTE: reference scales by n_embd, not head_size

    # --- embeddings: data-dependent gathers, left to plain XLA ---
    tok = jnp.take(params["tok_emb"], idx, axis=0)              # (B, T, C)
    pos = params["pos_emb"][:T]                                  # (T, C)
    x = (tok + pos[None, :, :]).reshape(BT, C)                   # fold batch into rows

    # --- per-layer weight packing (stack on leading L axis) ---
    layers = params["layers"]

    def stack(name):
        return jnp.stack([lp[name] for lp in layers])

    # Packed QKV with the attention scale folded into the Q columns.
    wqkv = jnp.stack([jnp.concatenate([lp["wq"] * scale, lp["wk"], lp["wv"]], axis=1)
                      for lp in layers])                         # (L, C, 3C)
    wo, bo = stack("wp"), stack("bp")                            # (L,C,C), (L,1,C)
    w1, b1 = stack("w1"), stack("b1")                            # (L,C,4C), (L,1,4C)
    w2, b2 = stack("w2"), stack("b2")                            # (L,4C,C), (L,1,C)
    g1, be1 = stack("g1"), stack("be1")
    g2, be2 = stack("g2"), stack("be2")

    # Block-diagonal causal mask over the folded rows, as an additive bias.
    row = jnp.arange(BT)[:, None]
    col = jnp.arange(BT)[None, :]
    allowed = (row // T == col // T) & (col <= row)              # same batch & causal
    mask_bias = jnp.where(allowed, 0.0, NEG_INF).astype(jnp.float32)   # (BT, BT)

    def const_spec(*dims):
        nd = len(dims)
        return pl.BlockSpec(tuple(dims), lambda l, nd=nd: (0,) * nd)

    def layer_spec(*dims):
        nd = len(dims)
        return pl.BlockSpec((None,) + tuple(dims),               # leading L dim squeezed
                            lambda l, nd=nd: (l,) + (0,) * nd)

    in_specs = [
        const_spec(BT, C),           # x (embeddings, batch folded into rows)
        const_spec(BT, BT),          # additive block-diagonal causal mask
        layer_spec(C, 3 * C),        # packed QKV weight (scale folded into Q)
        layer_spec(C, C),            # attention output projection
        layer_spec(1, C),            # projection bias
        layer_spec(C, H4),           # FFN W1
        layer_spec(1, H4),           # FFN b1
        layer_spec(H4, C),           # FFN W2
        layer_spec(1, C),            # FFN b2
        layer_spec(1, C),            # LN1 gamma
        layer_spec(1, C),            # LN1 beta
        layer_spec(1, C),            # LN2 gamma
        layer_spec(1, C),            # LN2 beta
        const_spec(1, C),            # LN_f gamma
        const_spec(1, C),            # LN_f beta
        const_spec(C, V),            # lm_head weight
        const_spec(1, V),            # lm_head bias
    ]

    logits = pl.pallas_call(
        functools.partial(bigram_stack_kernel, n_heads=N_HEADS),
        out_shape=jax.ShapeDtypeStruct((BT, V), jnp.float32),
        grid_spec=pltpu.PrefetchScalarGridSpec(
            num_scalar_prefetch=0,
            grid=(L,),                                   # one step per transformer block
            in_specs=in_specs,
            out_specs=const_spec(BT, V),                 # written only on the last step
            scratch_shapes=[pltpu.VMEM((BT, C), jnp.float32)],   # resident residual stream
        ),
        compiler_params=pltpu.CompilerParams(dimension_semantics=("arbitrary",)),
    )(x, mask_bias, wqkv, wo, bo, w1, b1, w2, b2, g1, be1, g2, be2,
      params["gf"], params["bef"], params["w_lm"], params["b_lm"])
    return logits.reshape(B, T, V)


def bigram_reference(idx, params):
    """Plain-JAX reference with identical math (eval-mode dropout)."""
    B, T = idx.shape
    C = N_EMBD
    tok = jnp.take(params["tok_emb"], idx, axis=0)
    pos = params["pos_emb"][:T]
    x = tok + pos[None, :, :]                                    # (B, T, C)
    row = jnp.arange(T)[:, None]
    col = jnp.arange(T)[None, :]
    causal = col <= row
    scale = C ** (-0.5)
    for lp in params["layers"]:
        h = _layernorm(x, lp["g1"], lp["be1"])
        q, k, v = h @ lp["wq"], h @ lp["wk"], h @ lp["wv"]       # (B, T, C)
        heads = []
        for hd in range(N_HEADS):
            lo = hd * HEAD_SIZE
            qh = q[..., lo:lo + HEAD_SIZE]
            kh = k[..., lo:lo + HEAD_SIZE]
            vh = v[..., lo:lo + HEAD_SIZE]
            wei = jnp.einsum('btd,bsd->bts', qh, kh) * scale
            wei = jnp.where(causal, wei, -jnp.inf)
            wei = jax.nn.softmax(wei, axis=-1)
            heads.append(jnp.einsum('bts,bsd->btd', wei, vh))
        sa = jnp.concatenate(heads, axis=-1) @ lp["wp"] + lp["bp"]
        x = x + sa
        h2 = _layernorm(x, lp["g2"], lp["be2"])
        ff = jnp.maximum(h2 @ lp["w1"] + lp["b1"], 0.0) @ lp["w2"] + lp["b2"]
        x = x + ff
    x = _layernorm(x, params["gf"], params["bef"])
    return x @ params["w_lm"] + params["b_lm"]


def init_params(key):
    C, H4, V, L = N_EMBD, 4 * N_EMBD, VOCAB, N_LAYER
    s = 0.05
    keys = jax.random.split(key, 4 + 9 * L)
    ki = iter(keys)
    layers = []
    for _ in range(L):
        layers.append({
            "wq": jax.random.normal(next(ki), (C, C), jnp.float32) * s,
            "wk": jax.random.normal(next(ki), (C, C), jnp.float32) * s,
            "wv": jax.random.normal(next(ki), (C, C), jnp.float32) * s,
            "wp": jax.random.normal(next(ki), (C, C), jnp.float32) * s,
            "bp": jax.random.normal(next(ki), (1, C), jnp.float32) * s,
            "w1": jax.random.normal(next(ki), (C, H4), jnp.float32) * s,
            "b1": jax.random.normal(next(ki), (1, H4), jnp.float32) * s,
            "w2": jax.random.normal(next(ki), (H4, C), jnp.float32) * s,
            "b2": jax.random.normal(next(ki), (1, C), jnp.float32) * s,
            # LayerNorm default init: gamma=1, beta=0
            "g1": jnp.ones((1, C), jnp.float32), "be1": jnp.zeros((1, C), jnp.float32),
            "g2": jnp.ones((1, C), jnp.float32), "be2": jnp.zeros((1, C), jnp.float32),
        })
    return {
        "layers": layers,
        "tok_emb": jax.random.normal(next(ki), (V, C), jnp.float32) * s,
        "pos_emb": jax.random.normal(next(ki), (BLOCK_SIZE, C), jnp.float32) * s,
        "gf": jnp.ones((1, C), jnp.float32),
        "bef": jnp.zeros((1, C), jnp.float32),
        "w_lm": jax.random.normal(next(ki), (C, V), jnp.float32) * s,
        "b_lm": jax.random.normal(next(ki), (1, V), jnp.float32) * s,
    }


if __name__ == "__main__":
    key = jax.random.PRNGKey(0)
    kidx, kp = jax.random.split(key)
    idx = jax.random.randint(kidx, (BATCH, SEQ_LEN), 0, VOCAB, dtype=jnp.int32)
    params = init_params(kp)

    logits = jax.jit(bigram_forward)(idx, params)
    logits = jax.block_until_ready(logits)

    ref = bigram_reference(idx, params)
    assert logits.shape == (BATCH, SEQ_LEN, VOCAB)
    assert jnp.allclose(logits, ref, atol=1e-3, rtol=1e-3), (
        "mismatch vs reference, max abs err = "
        f"{float(jnp.max(jnp.abs(logits - ref)))}")
    print("KERNEL_OK")
</pallas_src>

<mosaic_0001>
module attributes {stable_mosaic.version = 11 : i64} {
  func.func @bigram_stack_kernel(%arg0: i32, %arg1: memref<32x48xf32, #tpu.memory_space<vmem>>, %arg2: memref<32x32xf32, #tpu.memory_space<vmem>>, %arg3: memref<1x48x144xf32, #tpu.memory_space<vmem>>, %arg4: memref<1x48x48xf32, #tpu.memory_space<vmem>>, %arg5: memref<1x1x48xf32, #tpu.memory_space<vmem>>, %arg6: memref<1x48x192xf32, #tpu.memory_space<vmem>>, %arg7: memref<1x1x192xf32, #tpu.memory_space<vmem>>, %arg8: memref<1x192x48xf32, #tpu.memory_space<vmem>>, %arg9: memref<1x1x48xf32, #tpu.memory_space<vmem>>, %arg10: memref<1x1x48xf32, #tpu.memory_space<vmem>>, %arg11: memref<1x1x48xf32, #tpu.memory_space<vmem>>, %arg12: memref<1x1x48xf32, #tpu.memory_space<vmem>>, %arg13: memref<1x1x48xf32, #tpu.memory_space<vmem>>, %arg14: memref<1x48xf32, #tpu.memory_space<vmem>>, %arg15: memref<1x48xf32, #tpu.memory_space<vmem>>, %arg16: memref<48x65xf32, #tpu.memory_space<vmem>>, %arg17: memref<1x65xf32, #tpu.memory_space<vmem>>, %arg18: memref<32x65xf32, #tpu.memory_space<vmem>>, %arg19: memref<32x48xf32, #tpu.memory_space<vmem>>) attributes {dimension_semantics = [#tpu.dimension_semantics<arbitrary>], iteration_bounds = array<i64: 6>, scalar_prefetch = 0 : i64, scratch_operands = 1 : i64, tpu.core_type = #tpu.core_type<tc>, window_params = [{pipeline_mode = #tpu.pipeline_mode<synchronous>, transform_indices = @transform_0, window_bounds = array<i64: 32, 48>}, {pipeline_mode = #tpu.pipeline_mode<synchronous>, transform_indices = @transform_1, window_bounds = array<i64: 32, 32>}, {transform_indices = @transform_2, window_bounds = array<i64: 1, 48, 144>}, {transform_indices = @transform_3, window_bounds = array<i64: 1, 48, 48>}, {transform_indices = @transform_4, window_bounds = array<i64: 1, 1, 48>}, {transform_indices = @transform_5, window_bounds = array<i64: 1, 48, 192>}, {transform_indices = @transform_6, window_bounds = array<i64: 1, 1, 192>}, {transform_indices = @transform_7, window_bounds = array<i64: 1, 192, 48>}, {transform_indices = @transform_8, window_bounds = array<i64: 1, 1, 48>}, {transform_indices = @transform_9, window_bounds = array<i64: 1, 1, 48>}, {transform_indices = @transform_10, window_bounds = array<i64: 1, 1, 48>}, {transform_indices = @transform_11, window_bounds = array<i64: 1, 1, 48>}, {transform_indices = @transform_12, window_bounds = array<i64: 1, 1, 48>}, {pipeline_mode = #tpu.pipeline_mode<synchronous>, transform_indices = @transform_13, window_bounds = array<i64: 1, 48>}, {pipeline_mode = #tpu.pipeline_mode<synchronous>, transform_indices = @transform_14, window_bounds = array<i64: 1, 48>}, {pipeline_mode = #tpu.pipeline_mode<synchronous>, transform_indices = @transform_15, window_bounds = array<i64: 48, 65>}, {pipeline_mode = #tpu.pipeline_mode<synchronous>, transform_indices = @transform_16, window_bounds = array<i64: 1, 65>}, {pipeline_mode = #tpu.pipeline_mode<synchronous>, transform_indices = @transform_17, window_bounds = array<i64: 32, 65>}]} {
    %c0_i32 = arith.constant 0 : i32
    %0 = arith.cmpi eq, %arg0, %c0_i32 : i32
    %1 = arith.extui %0 : i1 to i32
    %c0_i32_0 = arith.constant 0 : i32
    %2 = arith.cmpi ne, %1, %c0_i32_0 : i32
    scf.if %2 {
      %c0_78 = arith.constant 0 : index
      %c0_79 = arith.constant 0 : index
      %186 = vector.load %arg1[%c0_78, %c0_79] : memref<32x48xf32, #tpu.memory_space<vmem>>, vector<32x48xf32>
      %c0_80 = arith.constant 0 : index
      %c0_81 = arith.constant 0 : index
      %187 = vector.load %arg19[%c0_80, %c0_81] : memref<32x48xf32, #tpu.memory_space<vmem>>, vector<32x48xf32>
      tpu.vector_store %arg19[%c0_80, %c0_81], %186 {strides = array<i32>} : memref<32x48xf32, #tpu.memory_space<vmem>>, vector<32x48xf32>,
    } else {
    }
    %c0 = arith.constant 0 : index
    %c0_1 = arith.constant 0 : index
    %3 = vector.load %arg19[%c0, %c0_1] : memref<32x48xf32, #tpu.memory_space<vmem>>, vector<32x48xf32>
    %c0_2 = arith.constant 0 : index
    %c0_3 = arith.constant 0 : index
    %4 = vector.load %arg2[%c0_2, %c0_3] : memref<32x32xf32, #tpu.memory_space<vmem>>, vector<32x32xf32>
    %c0_4 = arith.constant 0 : index
    %c0_5 = arith.constant 0 : index
    %c0_6 = arith.constant 0 : index
    %5 = vector.load %arg10[%c0_4, %c0_5, %c0_6] : memref<1x1x48xf32, #tpu.memory_space<vmem>>, vector<1x1x48xf32>
    %6 = vector.shape_cast %5 : vector<1x1x48xf32> to vector<1x48xf32>
    %c0_7 = arith.constant 0 : index
    %c0_8 = arith.constant 0 : index
    %c0_9 = arith.constant 0 : index
    %7 = vector.load %arg11[%c0_7, %c0_8, %c0_9] : memref<1x1x48xf32, #tpu.memory_space<vmem>>, vector<1x1x48xf32>
    %8 = vector.shape_cast %7 : vector<1x1x48xf32> to vector<1x48xf32>
    %cst = arith.constant dense<0.000000e+00> : vector<32xf32>
    %9 = vector.multi_reduction <add>, %3, %cst [1] : vector<32x48xf32> to vector<32xf32>
    %10 = vector.shape_cast %9 : vector<32xf32> to vector<32x1xf32>
    %cst_10 = arith.constant 4.800000e+01 : f32
    %11 = vector.broadcast %cst_10 : f32 to vector<32x1xf32>
    %12 = arith.divf %10, %11 : vector<32x1xf32>
    %13 = vector.broadcast %12 : vector<32x1xf32> to vector<32x48xf32>
    %14 = arith.subf %3, %13 : vector<32x48xf32>
    %15 = arith.mulf %14, %14 : vector<32x48xf32>
    %cst_11 = arith.constant dense<0.000000e+00> : vector<32xf32>
    %16 = vector.multi_reduction <add>, %15, %cst_11 [1] : vector<32x48xf32> to vector<32xf32>
    %17 = vector.shape_cast %16 : vector<32xf32> to vector<32x1xf32>
    %cst_12 = arith.constant 4.800000e+01 : f32
    %18 = vector.broadcast %cst_12 : f32 to vector<32x1xf32>
    %19 = arith.divf %17, %18 : vector<32x1xf32>
    %20 = vector.broadcast %12 : vector<32x1xf32> to vector<32x48xf32>
    %21 = arith.subf %3, %20 : vector<32x48xf32>
    %cst_13 = arith.constant 9.99999974E-6 : f32
    %22 = vector.broadcast %cst_13 : f32 to vector<32x1xf32>
    %23 = arith.addf %19, %22 : vector<32x1xf32>
    %24 = math.rsqrt %23 : vector<32x1xf32>
    %25 = vector.broadcast %24 : vector<32x1xf32> to vector<32x48xf32>
    %26 = arith.mulf %21, %25 : vector<32x48xf32>
    %27 = vector.broadcast %6 : vector<1x48xf32> to vector<32x48xf32>
    %28 = arith.mulf %26, %27 : vector<32x48xf32>
    %29 = vector.broadcast %8 : vector<1x48xf32> to vector<32x48xf32>
    %30 = arith.addf %28, %29 : vector<32x48xf32>
    %c0_14 = arith.constant 0 : index
    %c0_15 = arith.constant 0 : index
    %c0_16 = arith.constant 0 : index
    %31 = vector.load %arg3[%c0_14, %c0_15, %c0_16] : memref<1x48x144xf32, #tpu.memory_space<vmem>>, vector<1x48x144xf32>
    %32 = vector.shape_cast %31 : vector<1x48x144xf32> to vector<48x144xf32>
    %cst_17 = arith.constant dense<0.000000e+00> : vector<32x144xf32>
    %33 = tpu.matmul %30, %32, %cst_17 {dimension_numbers = #tpu.dot_dimension_numbers<[1], [0], [0], [1], [0, 0, 1, 1], [], []>} : vector<32x48xf32>, vector<48x144xf32>, vector<32x144xf32> -> vector<32x144xf32>
    %34 = vector.extract_strided_slice %33 {offsets = [0, 0], sizes = [32, 8], strides = [1, 1]} : vector<32x144xf32> to vector<32x8xf32>
    %35 = vector.extract_strided_slice %33 {offsets = [0, 48], sizes = [32, 8], strides = [1, 1]} : vector<32x144xf32> to vector<32x8xf32>
    %36 = vector.extract_strided_slice %33 {offsets = [0, 96], sizes = [32, 8], strides = [1, 1]} : vector<32x144xf32> to vector<32x8xf32>
    %cst_18 = arith.constant dense<0.000000e+00> : vector<32x32xf32>
    %37 = tpu.matmul %34, %35, %cst_18 {dimension_numbers = #tpu.dot_dimension_numbers<[1], [1], [0], [0], [0, 0, 1, 0], [], []>} : vector<32x8xf32>, vector<32x8xf32>, vector<32x32xf32> -> vector<32x32xf32>
    %38 = arith.addf %37, %4 : vector<32x32xf32>
    %cst_19 = arith.constant dense<0xFF800000> : vector<32xf32>
    %39 = vector.multi_reduction <maximumf>, %38, %cst_19 [1] : vector<32x32xf32> to vector<32xf32>
    %40 = vector.shape_cast %39 : vector<32xf32> to vector<32x1xf32>
    %41 = vector.broadcast %40 : vector<32x1xf32> to vector<32x32xf32>
    %42 = arith.subf %38, %41 : vector<32x32xf32>
    %43 = math.exp %42 : vector<32x32xf32>
    %cst_20 = arith.constant dense<0.000000e+00> : vector<32xf32>
    %44 = vector.multi_reduction <add>, %43, %cst_20 [1] : vector<32x32xf32> to vector<32xf32>
    %45 = vector.shape_cast %44 : vector<32xf32> to vector<32x1xf32>
    %46 = tpu.reciprocal %45 : vector<32x1xf32> -> vector<32x1xf32>
    %47 = vector.broadcast %46 : vector<32x1xf32> to vector<32x32xf32>
    %48 = arith.mulf %43, %47 : vector<32x32xf32>
    %cst_21 = arith.constant dense<0.000000e+00> : vector<32x8xf32>
    %49 = tpu.matmul %48, %36, %cst_21 {dimension_numbers = #tpu.dot_dimension_numbers<[1], [0], [0], [1], [0, 0, 1, 1], [], []>} : vector<32x32xf32>, vector<32x8xf32>, vector<32x8xf32> -> vector<32x8xf32>
    %50 = vector.extract_strided_slice %33 {offsets = [0, 8], sizes = [32, 8], strides = [1, 1]} : vector<32x144xf32> to vector<32x8xf32>
    %51 = vector.extract_strided_slice %33 {offsets = [0, 56], sizes = [32, 8], strides = [1, 1]} : vector<32x144xf32> to vector<32x8xf32>
    %52 = vector.extract_strided_slice %33 {offsets = [0, 104], sizes = [32, 8], strides = [1, 1]} : vector<32x144xf32> to vector<32x8xf32>
    %cst_22 = arith.constant dense<0.000000e+00> : vector<32x32xf32>
    %53 = tpu.matmul %50, %51, %cst_22 {dimension_numbers = #tpu.dot_dimension_numbers<[1], [1], [0], [0], [0, 0, 1, 0], [], []>} : vector<32x8xf32>, vector<32x8xf32>, vector<32x32xf32> -> vector<32x32xf32>
    %54 = arith.addf %53, %4 : vector<32x32xf32>
    %cst_23 = arith.constant dense<0xFF800000> : vector<32xf32>
    %55 = vector.multi_reduction <maximumf>, %54, %cst_23 [1] : vector<32x32xf32> to vector<32xf32>
    %56 = vector.shape_cast %55 : vector<32xf32> to vector<32x1xf32>
    %57 = vector.broadcast %56 : vector<32x1xf32> to vector<32x32xf32>
    %58 = arith.subf %54, %57 : vector<32x32xf32>
    %59 = math.exp %58 : vector<32x32xf32>
    %cst_24 = arith.constant dense<0.000000e+00> : vector<32xf32>
    %60 = vector.multi_reduction <add>, %59, %cst_24 [1] : vector<32x32xf32> to vector<32xf32>
    %61 = vector.shape_cast %60 : vector<32xf32> to vector<32x1xf32>
    %62 = tpu.reciprocal %61 : vector<32x1xf32> -> vector<32x1xf32>
    %63 = vector.broadcast %62 : vector<32x1xf32> to vector<32x32xf32>
    %64 = arith.mulf %59, %63 : vector<32x32xf32>
    %cst_25 = arith.constant dense<0.000000e+00> : vector<32x8xf32>
    %65 = tpu.matmul %64, %52, %cst_25 {dimension_numbers = #tpu.dot_dimension_numbers<[1], [0], [0], [1], [0, 0, 1, 1], [], []>} : vector<32x32xf32>, vector<32x8xf32>, vector<32x8xf32> -> vector<32x8xf32>
    %66 = vector.extract_strided_slice %33 {offsets = [0, 16], sizes = [32, 8], strides = [1, 1]} : vector<32x144xf32> to vector<32x8xf32>
    %67 = vector.extract_strided_slice %33 {offsets = [0, 64], sizes = [32, 8], strides = [1, 1]} : vector<32x144xf32> to vector<32x8xf32>
    %68 = vector.extract_strided_slice %33 {offsets = [0, 112], sizes = [32, 8], strides = [1, 1]} : vector<32x144xf32> to vector<32x8xf32>
    %cst_26 = arith.constant dense<0.000000e+00> : vector<32x32xf32>
    %69 = tpu.matmul %66, %67, %cst_26 {dimension_numbers = #tpu.dot_dimension_numbers<[1], [1], [0], [0], [0, 0, 1, 0], [], []>} : vector<32x8xf32>, vector<32x8xf32>, vector<32x32xf32> -> vector<32x32xf32>
    %70 = arith.addf %69, %4 : vector<32x32xf32>
    %cst_27 = arith.constant dense<0xFF800000> : vector<32xf32>
    %71 = vector.multi_reduction <maximumf>, %70, %cst_27 [1] : vector<32x32xf32> to vector<32xf32>
    %72 = vector.shape_cast %71 : vector<32xf32> to vector<32x1xf32>
    %73 = vector.broadcast %72 : vector<32x1xf32> to vector<32x32xf32>
    %74 = arith.subf %70, %73 : vector<32x32xf32>
    %75 = math.exp %74 : vector<32x32xf32>
    %cst_28 = arith.constant dense<0.000000e+00> : vector<32xf32>
    %76 = vector.multi_reduction <add>, %75, %cst_28 [1] : vector<32x32xf32> to vector<32xf32>
    %77 = vector.shape_cast %76 : vector<32xf32> to vector<32x1xf32>
    %78 = tpu.reciprocal %77 : vector<32x1xf32> -> vector<32x1xf32>
    %79 = vector.broadcast %78 : vector<32x1xf32> to vector<32x32xf32>
    %80 = arith.mulf %75, %79 : vector<32x32xf32>
    %cst_29 = arith.constant dense<0.000000e+00> : vector<32x8xf32>
    %81 = tpu.matmul %80, %68, %cst_29 {dimension_numbers = #tpu.dot_dimension_numbers<[1], [0], [0], [1], [0, 0, 1, 1], [], []>} : vector<32x32xf32>, vector<32x8xf32>, vector<32x8xf32> -> vector<32x8xf32>
    %82 = vector.extract_strided_slice %33 {offsets = [0, 24], sizes = [32, 8], strides = [1, 1]} : vector<32x144xf32> to vector<32x8xf32>
    %83 = vector.extract_strided_slice %33 {offsets = [0, 72], sizes = [32, 8], strides = [1, 1]} : vector<32x144xf32> to vector<32x8xf32>
    %84 = vector.extract_strided_slice %33 {offsets = [0, 120], sizes = [32, 8], strides = [1, 1]} : vector<32x144xf32> to vector<32x8xf32>
    %cst_30 = arith.constant dense<0.000000e+00> : vector<32x32xf32>
    %85 = tpu.matmul %82, %83, %cst_30 {dimension_numbers = #tpu.dot_dimension_numbers<[1], [1], [0], [0], [0, 0, 1, 0], [], []>} : vector<32x8xf32>, vector<32x8xf32>, vector<32x32xf32> -> vector<32x32xf32>
    %86 = arith.addf %85, %4 : vector<32x32xf32>
    %cst_31 = arith.constant dense<0xFF800000> : vector<32xf32>
    %87 = vector.multi_reduction <maximumf>, %86, %cst_31 [1] : vector<32x32xf32> to vector<32xf32>
    %88 = vector.shape_cast %87 : vector<32xf32> to vector<32x1xf32>
    %89 = vector.broadcast %88 : vector<32x1xf32> to vector<32x32xf32>
    %90 = arith.subf %86, %89 : vector<32x32xf32>
    %91 = math.exp %90 : vector<32x32xf32>
    %cst_32 = arith.constant dense<0.000000e+00> : vector<32xf32>
    %92 = vector.multi_reduction <add>, %91, %cst_32 [1] : vector<32x32xf32> to vector<32xf32>
    %93 = vector.shape_cast %92 : vector<32xf32> to vector<32x1xf32>
    %94 = tpu.reciprocal %93 : vector<32x1xf32> -> vector<32x1xf32>
    %95 = vector.broadcast %94 : vector<32x1xf32> to vector<32x32xf32>
    %96 = arith.mulf %91, %95 : vector<32x32xf32>
    %cst_33 = arith.constant dense<0.000000e+00> : vector<32x8xf32>
    %97 = tpu.matmul %96, %84, %cst_33 {dimension_numbers = #tpu.dot_dimension_numbers<[1], [0], [0], [1], [0, 0, 1, 1], [], []>} : vector<32x32xf32>, vector<32x8xf32>, vector<32x8xf32> -> vector<32x8xf32>
    %98 = vector.extract_strided_slice %33 {offsets = [0, 32], sizes = [32, 8], strides = [1, 1]} : vector<32x144xf32> to vector<32x8xf32>
    %99 = vector.extract_strided_slice %33 {offsets = [0, 80], sizes = [32, 8], strides = [1, 1]} : vector<32x144xf32> to vector<32x8xf32>
    %100 = vector.extract_strided_slice %33 {offsets = [0, 128], sizes = [32, 8], strides = [1, 1]} : vector<32x144xf32> to vector<32x8xf32>
    %cst_34 = arith.constant dense<0.000000e+00> : vector<32x32xf32>
    %101 = tpu.matmul %98, %99, %cst_34 {dimension_numbers = #tpu.dot_dimension_numbers<[1], [1], [0], [0], [0, 0, 1, 0], [], []>} : vector<32x8xf32>, vector<32x8xf32>, vector<32x32xf32> -> vector<32x32xf32>
    %102 = arith.addf %101, %4 : vector<32x32xf32>
    %cst_35 = arith.constant dense<0xFF800000> : vector<32xf32>
    %103 = vector.multi_reduction <maximumf>, %102, %cst_35 [1] : vector<32x32xf32> to vector<32xf32>
    %104 = vector.shape_cast %103 : vector<32xf32> to vector<32x1xf32>
    %105 = vector.broadcast %104 : vector<32x1xf32> to vector<32x32xf32>
    %106 = arith.subf %102, %105 : vector<32x32xf32>
    %107 = math.exp %106 : vector<32x32xf32>
    %cst_36 = arith.constant dense<0.000000e+00> : vector<32xf32>
    %108 = vector.multi_reduction <add>, %107, %cst_36 [1] : vector<32x32xf32> to vector<32xf32>
    %109 = vector.shape_cast %108 : vector<32xf32> to vector<32x1xf32>
    %110 = tpu.reciprocal %109 : vector<32x1xf32> -> vector<32x1xf32>
    %111 = vector.broadcast %110 : vector<32x1xf32> to vector<32x32xf32>
    %112 = arith.mulf %107, %111 : vector<32x32xf32>
    %cst_37 = arith.constant dense<0.000000e+00> : vector<32x8xf32>
    %113 = tpu.matmul %112, %100, %cst_37 {dimension_numbers = #tpu.dot_dimension_numbers<[1], [0], [0], [1], [0, 0, 1, 1], [], []>} : vector<32x32xf32>, vector<32x8xf32>, vector<32x8xf32> -> vector<32x8xf32>
    %114 = vector.extract_strided_slice %33 {offsets = [0, 40], sizes = [32, 8], strides = [1, 1]} : vector<32x144xf32> to vector<32x8xf32>
    %115 = vector.extract_strided_slice %33 {offsets = [0, 88], sizes = [32, 8], strides = [1, 1]} : vector<32x144xf32> to vector<32x8xf32>
    %116 = vector.extract_strided_slice %33 {offsets = [0, 136], sizes = [32, 8], strides = [1, 1]} : vector<32x144xf32> to vector<32x8xf32>
    %cst_38 = arith.constant dense<0.000000e+00> : vector<32x32xf32>
    %117 = tpu.matmul %114, %115, %cst_38 {dimension_numbers = #tpu.dot_dimension_numbers<[1], [1], [0], [0], [0, 0, 1, 0], [], []>} : vector<32x8xf32>, vector<32x8xf32>, vector<32x32xf32> -> vector<32x32xf32>
    %118 = arith.addf %117, %4 : vector<32x32xf32>
    %cst_39 = arith.constant dense<0xFF800000> : vector<32xf32>
    %119 = vector.multi_reduction <maximumf>, %118, %cst_39 [1] : vector<32x32xf32> to vector<32xf32>
    %120 = vector.shape_cast %119 : vector<32xf32> to vector<32x1xf32>
    %121 = vector.broadcast %120 : vector<32x1xf32> to vector<32x32xf32>
    %122 = arith.subf %118, %121 : vector<32x32xf32>
    %123 = math.exp %122 : vector<32x32xf32>
    %cst_40 = arith.constant dense<0.000000e+00> : vector<32xf32>
    %124 = vector.multi_reduction <add>, %123, %cst_40 [1] : vector<32x32xf32> to vector<32xf32>
    %125 = vector.shape_cast %124 : vector<32xf32> to vector<32x1xf32>
    %126 = tpu.reciprocal %125 : vector<32x1xf32> -> vector<32x1xf32>
    %127 = vector.broadcast %126 : vector<32x1xf32> to vector<32x32xf32>
    %128 = arith.mulf %123, %127 : vector<32x32xf32>
    %cst_41 = arith.constant dense<0.000000e+00> : vector<32x8xf32>
    %129 = tpu.matmul %128, %116, %cst_41 {dimension_numbers = #tpu.dot_dimension_numbers<[1], [0], [0], [1], [0, 0, 1, 1], [], []>} : vector<32x32xf32>, vector<32x8xf32>, vector<32x8xf32> -> vector<32x8xf32>
    %130 = tpu.concatenate %49, %65, %81, %97, %113, %129 in 1 : vector<32x8xf32>, vector<32x8xf32>, vector<32x8xf32>, vector<32x8xf32>, vector<32x8xf32>, vector<32x8xf32> -> vector<32x48xf32>
    %c0_42 = arith.constant 0 : index
    %c0_43 = arith.constant 0 : index
    %c0_44 = arith.constant 0 : index
    %131 = vector.load %arg4[%c0_42, %c0_43, %c0_44] : memref<1x48x48xf32, #tpu.memory_space<vmem>>, vector<1x48x48xf32>
    %132 = vector.shape_cast %131 : vector<1x48x48xf32> to vector<48x48xf32>
    %cst_45 = arith.constant dense<0.000000e+00> : vector<32x48xf32>
    %133 = tpu.matmul %130, %132, %cst_45 {dimension_numbers = #tpu.dot_dimension_numbers<[1], [0], [0], [1], [0, 0, 1, 1], [], []>} : vector<32x48xf32>, vector<48x48xf32>, vector<32x48xf32> -> vector<32x48xf32>
    %c0_46 = arith.constant 0 : index
    %c0_47 = arith.constant 0 : index
    %c0_48 = arith.constant 0 : index
    %134 = vector.load %arg5[%c0_46, %c0_47, %c0_48] : memref<1x1x48xf32, #tpu.memory_space<vmem>>, vector<1x1x48xf32>
    %135 = vector.shape_cast %134 : vector<1x1x48xf32> to vector<1x48xf32>
    %136 = vector.broadcast %135 : vector<1x48xf32> to vector<32x48xf32>
    %137 = arith.addf %133, %136 : vector<32x48xf32>
    %138 = arith.addf %3, %137 : vector<32x48xf32>
    %c0_49 = arith.constant 0 : index
    %c0_50 = arith.constant 0 : index
    %c0_51 = arith.constant 0 : index
    %139 = vector.load %arg12[%c0_49, %c0_50, %c0_51] : memref<1x1x48xf32, #tpu.memory_space<vmem>>, vector<1x1x48xf32>
    %140 = vector.shape_cast %139 : vector<1x1x48xf32> to vector<1x48xf32>
    %c0_52 = arith.constant 0 : index
    %c0_53 = arith.constant 0 : index
    %c0_54 = arith.constant 0 : index
    %141 = vector.load %arg13[%c0_52, %c0_53, %c0_54] : memref<1x1x48xf32, #tpu.memory_space<vmem>>, vector<1x1x48xf32>
    %142 = vector.shape_cast %141 : vector<1x1x48xf32> to vector<1x48xf32>
    %cst_55 = arith.constant dense<0.000000e+00> : vector<32xf32>
    %143 = vector.multi_reduction <add>, %138, %cst_55 [1] : vector<32x48xf32> to vector<32xf32>
    %144 = vector.shape_cast %143 : vector<32xf32> to vector<32x1xf32>
    %cst_56 = arith.constant 4.800000e+01 : f32
    %145 = vector.broadcast %cst_56 : f32 to vector<32x1xf32>
    %146 = arith.divf %144, %145 : vector<32x1xf32>
    %147 = vector.broadcast %146 : vector<32x1xf32> to vector<32x48xf32>
    %148 = arith.subf %138, %147 : vector<32x48xf32>
    %149 = arith.mulf %148, %148 : vector<32x48xf32>
    %cst_57 = arith.constant dense<0.000000e+00> : vector<32xf32>
    %150 = vector.multi_reduction <add>, %149, %cst_57 [1] : vector<32x48xf32> to vector<32xf32>
    %151 = vector.shape_cast %150 : vector<32xf32> to vector<32x1xf32>
    %cst_58 = arith.constant 4.800000e+01 : f32
    %152 = vector.broadcast %cst_58 : f32 to vector<32x1xf32>
    %153 = arith.divf %151, %152 : vector<32x1xf32>
    %154 = vector.broadcast %146 : vector<32x1xf32> to vector<32x48xf32>
    %155 = arith.subf %138, %154 : vector<32x48xf32>
    %cst_59 = arith.constant 9.99999974E-6 : f32
    %156 = vector.broadcast %cst_59 : f32 to vector<32x1xf32>
    %157 = arith.addf %153, %156 : vector<32x1xf32>
    %158 = math.rsqrt %157 : vector<32x1xf32>
    %159 = vector.broadcast %158 : vector<32x1xf32> to vector<32x48xf32>
    %160 = arith.mulf %155, %159 : vector<32x48xf32>
    %161 = vector.broadcast %140 : vector<1x48xf32> to vector<32x48xf32>
    %162 = arith.mulf %160, %161 : vector<32x48xf32>
    %163 = vector.broadcast %142 : vector<1x48xf32> to vector<32x48xf32>
    %164 = arith.addf %162, %163 : vector<32x48xf32>
    %c0_60 = arith.constant 0 : index
    %c0_61 = arith.constant 0 : index
    %c0_62 = arith.constant 0 : index
    %165 = vector.load %arg6[%c0_60, %c0_61, %c0_62] : memref<1x48x192xf32, #tpu.memory_space<vmem>>, vector<1x48x192xf32>
    %166 = vector.shape_cast %165 : vector<1x48x192xf32> to vector<48x192xf32>
    %cst_63 = arith.constant dense<0.000000e+00> : vector<32x192xf32>
    %167 = tpu.matmul %164, %166, %cst_63 {dimension_numbers = #tpu.dot_dimension_numbers<[1], [0], [0], [1], [0, 0, 1, 1], [], []>} : vector<32x48xf32>, vector<48x192xf32>, vector<32x192xf32> -> vector<32x192xf32>
    %c0_64 = arith.constant 0 : index
    %c0_65 = arith.constant 0 : index
    %c0_66 = arith.constant 0 : index
    %168 = vector.load %arg7[%c0_64, %c0_65, %c0_66] : memref<1x1x192xf32, #tpu.memory_space<vmem>>, vector<1x1x192xf32>
    %169 = vector.shape_cast %168 : vector<1x1x192xf32> to vector<1x192xf32>
    %170 = vector.broadcast %169 : vector<1x192xf32> to vector<32x192xf32>
    %171 = arith.addf %167, %170 : vector<32x192xf32>
    %cst_67 = arith.constant 0.000000e+00 : f32
    %172 = vector.broadcast %cst_67 : f32 to vector<32x192xf32>
    %173 = arith.maximumf %171, %172 : vector<32x192xf32>
    %c0_68 = arith.constant 0 : index
    %c0_69 = arith.constant 0 : index
    %c0_70 = arith.constant 0 : index
    %174 = vector.load %arg8[%c0_68, %c0_69, %c0_70] : memref<1x192x48xf32, #tpu.memory_space<vmem>>, vector<1x192x48xf32>
    %175 = vector.shape_cast %174 : vector<1x192x48xf32> to vector<192x48xf32>
    %cst_71 = arith.constant dense<0.000000e+00> : vector<32x48xf32>
    %176 = tpu.matmul %173, %175, %cst_71 {dimension_numbers = #tpu.dot_dimension_numbers<[1], [0], [0], [1], [0, 0, 1, 1], [], []>} : vector<32x192xf32>, vector<192x48xf32>, vector<32x48xf32> -> vector<32x48xf32>
    %c0_72 = arith.constant 0 : index
    %c0_73 = arith.constant 0 : index
    %c0_74 = arith.constant 0 : index
    %177 = vector.load %arg9[%c0_72, %c0_73, %c0_74] : memref<1x1x48xf32, #tpu.memory_space<vmem>>, vector<1x1x48xf32>
    %178 = vector.shape_cast %177 : vector<1x1x48xf32> to vector<1x48xf32>
    %179 = vector.broadcast %178 : vector<1x48xf32> to vector<32x48xf32>
    %180 = arith.addf %176, %179 : vector<32x48xf32>
    %181 = arith.addf %138, %180 : vector<32x48xf32>
    %c0_75 = arith.constant 0 : index
    %c0_76 = arith.constant 0 : index
    %182 = vector.load %arg19[%c0_75, %c0_76] : memref<32x48xf32, #tpu.memory_space<vmem>>, vector<32x48xf32>
    tpu.vector_store %arg19[%c0_75, %c0_76], %181 {strides = array<i32>} : memref<32x48xf32, #tpu.memory_space<vmem>>, vector<32x48xf32>,
    %c5_i32 = arith.constant 5 : i32
    %183 = arith.cmpi eq, %arg0, %c5_i32 : i32
    %184 = arith.extui %183 : i1 to i32
    %c0_i32_77 = arith.constant 0 : i32
    %185 = arith.cmpi ne, %184, %c0_i32_77 : i32
    scf.if %185 {
      %c0_78 = arith.constant 0 : index
      %c0_79 = arith.constant 0 : index
      %186 = vector.load %arg14[%c0_78, %c0_79] : memref<1x48xf32, #tpu.memory_space<vmem>>, vector<1x48xf32>
      %c0_80 = arith.constant 0 : index
      %c0_81 = arith.constant 0 : index
      %187 = vector.load %arg15[%c0_80, %c0_81] : memref<1x48xf32, #tpu.memory_space<vmem>>, vector<1x48xf32>
      %cst_82 = arith.constant dense<0.000000e+00> : vector<32xf32>
      %188 = vector.multi_reduction <add>, %181, %cst_82 [1] : vector<32x48xf32> to vector<32xf32>
      %189 = vector.shape_cast %188 : vector<32xf32> to vector<32x1xf32>
      %cst_83 = arith.constant 4.800000e+01 : f32
      %190 = vector.broadcast %cst_83 : f32 to vector<32x1xf32>
      %191 = arith.divf %189, %190 : vector<32x1xf32>
      %192 = vector.broadcast %191 : vector<32x1xf32> to vector<32x48xf32>
      %193 = arith.subf %181, %192 : vector<32x48xf32>
      %194 = arith.mulf %193, %193 : vector<32x48xf32>
      %cst_84 = arith.constant dense<0.000000e+00> : vector<32xf32>
      %195 = vector.multi_reduction <add>, %194, %cst_84 [1] : vector<32x48xf32> to vector<32xf32>
      %196 = vector.shape_cast %195 : vector<32xf32> to vector<32x1xf32>
      %cst_85 = arith.constant 4.800000e+01 : f32
      %197 = vector.broadcast %cst_85 : f32 to vector<32x1xf32>
      %198 = arith.divf %196, %197 : vector<32x1xf32>
      %199 = vector.broadcast %191 : vector<32x1xf32> to vector<32x48xf32>
      %200 = arith.subf %181, %199 : vector<32x48xf32>
      %cst_86 = arith.constant 9.99999974E-6 : f32
      %201 = vector.broadcast %cst_86 : f32 to vector<32x1xf32>
      %202 = arith.addf %198, %201 : vector<32x1xf32>
      %203 = math.rsqrt %202 : vector<32x1xf32>
      %204 = vector.broadcast %203 : vector<32x1xf32> to vector<32x48xf32>
      %205 = arith.mulf %200, %204 : vector<32x48xf32>
      %206 = vector.broadcast %186 : vector<1x48xf32> to vector<32x48xf32>
      %207 = arith.mulf %205, %206 : vector<32x48xf32>
      %208 = vector.broadcast %187 : vector<1x48xf32> to vector<32x48xf32>
      %209 = arith.addf %207, %208 : vector<32x48xf32>
      %c0_87 = arith.constant 0 : index
      %c0_88 = arith.constant 0 : index
      %210 = vector.load %arg16[%c0_87, %c0_88] : memref<48x65xf32, #tpu.memory_space<vmem>>, vector<48x65xf32>
      %cst_89 = arith.constant dense<0.000000e+00> : vector<32x65xf32>
      %211 = tpu.matmul %209, %210, %cst_89 {dimension_numbers = #tpu.dot_dimension_numbers<[1], [0], [0], [1], [0, 0, 1, 1], [], []>} : vector<32x48xf32>, vector<48x65xf32>, vector<32x65xf32> -> vector<32x65xf32>
      %c0_90 = arith.constant 0 : index
      %c0_91 = arith.constant 0 : index
      %212 = vector.load %arg17[%c0_90, %c0_91] : memref<1x65xf32, #tpu.memory_space<vmem>>, vector<1x65xf32>
      %213 = vector.broadcast %212 : vector<1x65xf32> to vector<32x65xf32>
      %214 = arith.addf %211, %213 : vector<32x65xf32>
      %c0_92 = arith.constant 0 : index
      %c0_93 = arith.constant 0 : index
      %215 = vector.load %arg18[%c0_92, %c0_93] : memref<32x65xf32, #tpu.memory_space<vmem>>, vector<32x65xf32>
      tpu.vector_store %arg18[%c0_92, %c0_93], %214 {strides = array<i32>} : memref<32x65xf32, #tpu.memory_space<vmem>>, vector<32x65xf32>,
    } else {
    }
    return
  }
  func.func @transform_0(%arg0: i32) -> (i32, i32) {
    %c0_i32 = arith.constant 0 : i32
    %c0_i32_0 = arith.constant 0 : i32
    %c0_i32_1 = arith.constant 0 : i32
    return %c0_i32, %c0_i32_0 : i32, i32
  }
  func.func @transform_1(%arg0: i32) -> (i32, i32) {
    %c0_i32 = arith.constant 0 : i32
    %c0_i32_0 = arith.constant 0 : i32
    %c0_i32_1 = arith.constant 0 : i32
    return %c0_i32, %c0_i32_0 : i32, i32
  }
  func.func @transform_2(%arg0: i32) -> (i32, i32, i32) {
    %c0_i32 = arith.constant 0 : i32
    %c0_i32_0 = arith.constant 0 : i32
    %c0_i32_1 = arith.constant 0 : i32
    return %arg0, %c0_i32, %c0_i32_0 : i32, i32, i32
  }
  func.func @transform_3(%arg0: i32) -> (i32, i32, i32) {
    %c0_i32 = arith.constant 0 : i32
    %c0_i32_0 = arith.constant 0 : i32
    %c0_i32_1 = arith.constant 0 : i32
    return %arg0, %c0_i32, %c0_i32_0 : i32, i32, i32
  }
  func.func @transform_4(%arg0: i32) -> (i32, i32, i32) {
    %c0_i32 = arith.constant 0 : i32
    %c0_i32_0 = arith.constant 0 : i32
    %c0_i32_1 = arith.constant 0 : i32
    return %arg0, %c0_i32, %c0_i32_0 : i32, i32, i32
  }
  func.func @transform_5(%arg0: i32) -> (i32, i32, i32) {
    %c0_i32 = arith.constant 0 : i32
    %c0_i32_0 = arith.constant 0 : i32
    %c0_i32_1 = arith.constant 0 : i32
    return %arg0, %c0_i32, %c0_i32_0 : i32, i32, i32
  }
  func.func @transform_6(%arg0: i32) -> (i32, i32, i32) {
    %c0_i32 = arith.constant 0 : i32
    %c0_i32_0 = arith.constant 0 : i32
    %c0_i32_1 = arith.constant 0 : i32
    return %arg0, %c0_i32, %c0_i32_0 : i32, i32, i32
  }
  func.func @transform_7(%arg0: i32) -> (i32, i32, i32) {
    %c0_i32 = arith.constant 0 : i32
    %c0_i32_0 = arith.constant 0 : i32
    %c0_i32_1 = arith.constant 0 : i32
    return %arg0, %c0_i32, %c0_i32_0 : i32, i32, i32
  }
  func.func @transform_8(%arg0: i32) -> (i32, i32, i32) {
    %c0_i32 = arith.constant 0 : i32
    %c0_i32_0 = arith.constant 0 : i32
    %c0_i32_1 = arith.constant 0 : i32
    return %arg0, %c0_i32, %c0_i32_0 : i32, i32, i32
  }
  func.func @transform_9(%arg0: i32) -> (i32, i32, i32) {
    %c0_i32 = arith.constant 0 : i32
    %c0_i32_0 = arith.constant 0 : i32
    %c0_i32_1 = arith.constant 0 : i32
    return %arg0, %c0_i32, %c0_i32_0 : i32, i32, i32
  }
  func.func @transform_10(%arg0: i32) -> (i32, i32, i32) {
    %c0_i32 = arith.constant 0 : i32
    %c0_i32_0 = arith.constant 0 : i32
    %c0_i32_1 = arith.constant 0 : i32
    return %arg0, %c0_i32, %c0_i32_0 : i32, i32, i32
  }
  func.func @transform_11(%arg0: i32) -> (i32, i32, i32) {
    %c0_i32 = arith.constant 0 : i32
    %c0_i32_0 = arith.constant 0 : i32
    %c0_i32_1 = arith.constant 0 : i32
    return %arg0, %c0_i32, %c0_i32_0 : i32, i32, i32
  }
  func.func @transform_12(%arg0: i32) -> (i32, i32, i32) {
    %c0_i32 = arith.constant 0 : i32
    %c0_i32_0 = arith.constant 0 : i32
    %c0_i32_1 = arith.constant 0 : i32
    return %arg0, %c0_i32, %c0_i32_0 : i32, i32, i32
  }
  func.func @transform_13(%arg0: i32) -> (i32, i32) {
    %c0_i32 = arith.constant 0 : i32
    %c0_i32_0 = arith.constant 0 : i32
    %c0_i32_1 = arith.constant 0 : i32
    return %c0_i32, %c0_i32_0 : i32, i32
  }
  func.func @transform_14(%arg0: i32) -> (i32, i32) {
    %c0_i32 = arith.constant 0 : i32
    %c0_i32_0 = arith.constant 0 : i32
    %c0_i32_1 = arith.constant 0 : i32
    return %c0_i32, %c0_i32_0 : i32, i32
  }
  func.func @transform_15(%arg0: i32) -> (i32, i32) {
    %c0_i32 = arith.constant 0 : i32
    %c0_i32_0 = arith.constant 0 : i32
    %c0_i32_1 = arith.constant 0 : i32
    return %c0_i32, %c0_i32_0 : i32, i32
  }
  func.func @transform_16(%arg0: i32) -> (i32, i32) {
    %c0_i32 = arith.constant 0 : i32
    %c0_i32_0 = arith.constant 0 : i32
    %c0_i32_1 = arith.constant 0 : i32
    return %c0_i32, %c0_i32_0 : i32, i32
  }
  func.func @transform_17(%arg0: i32) -> (i32, i32) {
    %c0_i32 = arith.constant 0 : i32
    %c0_i32_0 = arith.constant 0 : i32
    %c0_i32_1 = arith.constant 0 : i32
    return %c0_i32, %c0_i32_0 : i32, i32
  }
}

</mosaic_0001>

<bundles_post_ra>
// kernel: bigram_forward.1
= control target key start
LH: loop header
LB: loop body
LE: loop exit
PB: predicated region body
PF: predicated region fallthrough
CT: control target
= control target key end

     0   :  { %s5315_s0 = inlined_call_operand.vmem [shape: f32[32,48], index: 0, kind: input, shape index: {}]   ;;  %s5316_s1 = inlined_call_operand.vmem [shape: f32[32,32], index: 1, kind: input, shape index: {}]   ;;  %s5317_s2 = inlined_call_operand.vmem [shape: f32[6,48,144], index: 2, kind: input, shape index: {}]   ;;  %s5318_s3 = inlined_call_operand.vmem [shape: f32[6,48,48], index: 3, kind: input, shape index: {}]   ;;  %s5319_s4 = inlined_call_operand.vmem [shape: f32[6,1,48], index: 4, kind: input, shape index: {}]   ;;  %s5320_s5 = inlined_call_operand.vmem [shape: f32[6,48,192], index: 5, kind: input, shape index: {}]   ;;  %s5321_s6 = inlined_call_operand.vmem [shape: f32[6,1,192], index: 6, kind: input, shape index: {}]   ;;  %s5322_s7 = inlined_call_operand.vmem [shape: f32[6,192,48], index: 7, kind: input, shape index: {}]   ;;  %s5323_s8 = inlined_call_operand.vmem [shape: f32[6,1,48], index: 8, kind: input, shape index: {}]   ;;  %s5324_s9 = inlined_call_operand.vmem [shape: f32[6,1,48], index: 9, kind: input, shape index: {}]   ;;  %s5325_s10 = inlined_call_operand.vmem [shape: f32[6,1,48], index: 10, kind: input, shape index: {}]   ;;  %s5326_s11 = inlined_call_operand.vmem [shape: f32[6,1,48], index: 11, kind: input, shape index: {}]   ;;  %s5327_s12 = inlined_call_operand.vmem [shape: f32[6,1,48], index: 12, kind: input, shape index: {}]   ;;  %s5328_s13 = inlined_call_operand.vmem [shape: f32[1,48], index: 13, kind: input, shape index: {}]   ;;  %s5329_s14 = inlined_call_operand.vmem [shape: f32[1,48], index: 14, kind: input, shape index: {}]   ;;  %s5330_s15 = inlined_call_operand.vmem [shape: f32[48,65], index: 15, kind: input, shape index: {}]   ;;  %s5331_s16 = inlined_call_operand.vmem [shape: f32[1,65], index: 16, kind: input, shape index: {}]   ;;  %s5332_s17 = inlined_call_operand.hbm [shape: f32[32,65], index: 17, kind: output, shape index: {}]  }
   0x1   :  { %5338 = sst [smem:[#allocation7_spill]] %s5315_s0 }
   0x2   :  { %5339 = sst [smem:[#allocation8_spill]] %s5316_s1 }
   0x3   :  { %5340 = sst [smem:[#allocation9_spill]] %s5317_s2 }
   0x4   :  { %5341 = sst [smem:[#allocation10_spill]] %s5318_s3 }
   0x5   :  { %5342 = sst [smem:[#allocation11_spill]] %s5320_s5 }
   0x6   :  { %5343 = sst [smem:[#allocation12_spill]] %s5328_s13 }
   0x7   :  { %5344 = sst [smem:[#allocation13_spill]] %s5329_s14 }
   0x8   :  { %5345 = sst [smem:[#allocation14_spill]] %s5330_s15 }
   0x9   :  { %5346 = sst [smem:[#allocation15_spill]] %s5331_s16 }
   0xa   :  { %5347 = sst [smem:[#allocation16_spill]] %s5332_s17 }
   0xb   :  { %22 = vsyncpa [#allocation4], 0  ;;  %s4487_s24 = smov 0  }
   0xc LB: > { %5348 = sst [smem:[#allocation6_spill]] %s4376_s24  ;;  %s4493_s25 = sadd.s32 4294967295, %s4376_s24   ;;  %s4376_s24 = sphi %s4487_s24, %s28_s24  }
   0xd   : > { %p3423_p0 = scmp.ge.s32.totalorder %s4376_s24, 1  ;;  %p570_p1 = scmp.lt.s32.totalorder %s4376_s24, 7 }
   0xf   : > { %p571_p2 = pnand %p3423_p0, %p570_p1 }
  0x10   : > { %p654_p3 = scmp.lt.s32.totalorder (!%p571_p2), %s4493_s25, 5  ;;  %s5349_s2 = sld [smem:[#allocation9_spill]] (!%p571_p2) }
  0x11   : > { %574 = sbr.rel (%p571_p2) target bundleno = 4955 (0x135b), region = 88  ;;  %s5350_s5 = sld [smem:[#allocation11_spill]] (!%p571_p2) }
  0x12   : > { %s5351_s3 = sld [smem:[#allocation10_spill]] (!%p571_p2)  ;;  %p3429_p4 = scmp.ne.s32.totalorder (!%p571_p2), %s4493_s25, 0 }
  0x18   : > { %s4499_s26 = scalar_select %p654_p3, %s4493_s25, 5 }
  0x19   : > { %s5352_s21 = sld [smem:[#allocation7_spill]] (!%p3429_p4)  ;;  %vm704_vm0 = vcmask (!%p3429_p4), 392192  }
  0x1a   : > { %s4066_s27 = smul.u32 96, %s4499_s26  ;;  %s3427_s18 = sshll.u32 %s4499_s26, 1 }
  0x1b   : > { %s4067_s30 = smul.u32 48, %s4499_s26  ;;  %s4526_s29 = scalar_lea.vmem %s5321_s6, %s3427_s18 }
  0x1c   : > { %s4511_s20 = scalar_lea.vmem %s5349_s2, %s4066_s27  ;;  %s4516_s23 = scalar_lea.vmem %s5350_s5, %s4066_s27 }
  0x1d   : > { %s4521_s16 = scalar_lea.vmem %s5351_s3, %s4067_s30  ;;  %s4068_s0 = smul.u32 192, %s4499_s26 }
  0x1e   : > { %s683_s1 = scalar_lea.vmem %s5323_s8, %s4499_s26  ;;  %s686_s27 = scalar_lea.vmem %s5324_s9, %s4499_s26 }
  0x1f   : > { %s689_s17 = scalar_lea.vmem %s5325_s10, %s4499_s26  ;;  %s4544_s3 = scalar_lea.vmem %s5322_s7, %s4068_s0  ;;  %v700_v0 = vld [vmem:[%s5352_s21] sm:$0xff] (!%p3429_p4)  ;;  %v701_v1 = vld [vmem:[%s5352_s21 + $0x8] sm:$0xff] (!%p3429_p4)  ;;  %v702_v2 = vld [vmem:[%s5352_s21 + $0x10] sm:$0xff] (!%p3429_p4) }
  0x20   : > { %s692_s28 = scalar_lea.vmem %s5326_s11, %s4499_s26  ;;  %s695_s19 = scalar_lea.vmem %s5327_s12, %s4499_s26  ;;  %705 = vst.msk [vmem:[#allocation2] sm:$0xff] (!%p3429_p4), %vm704_vm0, %v700_v0  ;;  %706 = vst.msk [vmem:[#allocation2 + $0x8] sm:$0xff] (!%p3429_p4), %vm704_vm0, %v701_v1  ;;  %v703_v3 = vld [vmem:[%s5352_s21 + $0x18] sm:$0xff] (!%p3429_p4) }
  0x21   : > { %699 = sbr.rel (%p3429_p4) target bundleno = 40 (0x28), region = 92  ;;  %707 = vst.msk [vmem:[#allocation2 + $0x10] sm:$0xff] (!%p3429_p4), %vm704_vm0, %v702_v2  ;;  %708 = vst.msk [vmem:[#allocation2 + $0x18] sm:$0xff] (!%p3429_p4), %vm704_vm0, %v703_v3 }
  0x28 PF: > { %v709_v4 = vld [vmem:[#allocation2] sm:$0xff]  ;;  %vm719_vm1 = vcmask 392192   ;;  %v711_v5 = vld [vmem:[#allocation2 + $0x10] sm:$0xff]  ;;  %v710_v6 = vld [vmem:[#allocation2 + $0x8] sm:$0xff]  ;;  %v4378_v48 = vmov 0.0   ;;  %vm918_vm2 = vcmask 64512  }
  0x29   : > { %v720_v7 = vsel %vm719_vm1, %v709_v4, 0.0  ;;  %v726_v8 = vsel %vm719_vm1, %v711_v5, 0.0  ;;  %v712_v9 = vld [vmem:[#allocation2 + $0x18] sm:$0xff]  ;;  %v723_v10 = vsel %vm719_vm1, %v710_v6, 0.0  ;;  %v794_v32 = vld [vmem:[%s4511_s20 + $0x8] sm:$0xff]  ;;  %v793_v35 = vld [vmem:[%s4511_s20] sm:$0xff]  ;;  %881 = vmatprep.mubr.f32.mxu0 %v4378_v48 }
  0x2a   : > { %721 = vadd.xlane.f32.xlu0 %v720_v7  ;;  %727 = vadd.xlane.f32.xlu1 %v726_v8  ;;  %v729_v11 = vsel %vm719_vm1, %v712_v9, 0.0  ;;  %v796_v33 = vld [vmem:[%s4511_s20 + $0x18] sm:$0xff]  ;;  %v795_v36 = vld [vmem:[%s4511_s20 + $0x10] sm:$0xff]  ;;  %v798_v38 = vld [vmem:[%s4511_s20 + $0x28] sm:$0xff]  ;;  %s5355_s22 = sld [smem:[#allocation8_spill]]  ;;  %vm1020_vm4 = vcmask 261120  }
  0x2b   : > { %v3856_v34 = vpack.c.bf16 %v796_v33, %v794_v32  ;;  %v3858_v37 = vpack.c.bf16 %v795_v36, %v793_v35  ;;  %v800_v39 = vld [vmem:[%s4511_s20 + $0x38] sm:$0xff]  ;;  %v797_v41 = vld [vmem:[%s4511_s20 + $0x20] sm:$0xff]  ;;  %v799_v42 = vld [vmem:[%s4511_s20 + $0x30] sm:$0xff]  ;;  %s4380_s18 = smov 32   ;;  %s4381_s13 = smov 72   ;;  %vm2600_vm5 = vcmask 130048  }
  0x2c   : > { %v3860_v40 = vpack.c.bf16 %v800_v39, %v798_v38  ;;  %v802_v43 = vld [vmem:[%s4511_s20 + $0x48] sm:$0xff]  ;;  %v3862_v44 = vpack.c.bf16 %v799_v42, %v797_v41  ;;  %v804_v45 = vld [vmem:[%s4511_s20 + $0x58] sm:$0xff]  ;;  %v801_v46 = vld [vmem:[%s4511_s20 + $0x40] sm:$0xff]  ;;  %s4382_s2 = smov 64   ;;  %s4385_s15 = smov 24   ;;  %vm2605_vm6 = vcmask 195584  }
  0x2d   : > { %3857 = vmatprep.subr.bf16.mxu0 %v3856_v34  ;;  %v803_v47 = vld [vmem:[%s4511_s20 + $0x50] sm:$0xff]  ;;  %v3864_v49 = vpack.c.bf16 %v804_v45, %v802_v43  ;;  %v3430_v0 = vld [vmem:[%s686_s27] ss:$0 sm:$0xff]  ;;  %s4379_s27 = smov 80   ;;  %vm4662_vm3 = vmpackc.low %vm918_vm2, %vm918_vm2  ;;  %s4386_s24 = smov 16   ;;  %vm2614_vm7 = vcmask 326656  }
  0x2e   : > { %724 = vadd.xlane.f32.xlu0 %v723_v10  ;;  %730 = vadd.xlane.f32.xlu1 %v729_v11  ;;  %v3866_v50 = vpack.c.bf16 %v803_v47, %v801_v46  ;;  %v3431_v2 = vld [vmem:[%s689_s17] ss:$0 sm:$0xff]  ;;  %s4384_s17 = smov 112   ;;  %s4387_s0 = smov 56   ;;  %vm2971_vm8 = vcmask 523264  }
  0x2f   : > { %3859 = vmatpush1.bf16.msra.mxu0 %v3858_v37  ;;  %s4388_s30 = smov 104   ;;  %s4389_s5 = smov 48  }
  0x30   : > { %3861 = vmatprep.subr.bf16.mxu0 %v3860_v40  ;;  %v4683_v40 = vld [vmem:[%s5355_s22 + $0x8] sm:$0xff]  ;;  %v4688_v41 = vld [vmem:[%s5355_s22] sm:$0xff]  ;;  %v4695_v46 = vld [vmem:[%s5355_s22 + $0x18] sm:$0xff]  ;;  %s4390_s14 = smov 96   ;;  %s4391_s20 = smov 8  }
  0x31   : > { %p3524_p5 = scmp.ne.s32.totalorder %s4493_s25, 5 }
  0x32   : > { %vm3265_vm9 = vcmask (!%p3524_p5), 531456  }
  0x33   : > { %3863 = vmatpush1.bf16.msra.mxu0 %v3862_v44 }
  0x34   : > { %3865 = vmatprep.subr.bf16.mxu0 %v3864_v49  ;;  %v4701_v49 = vld [vmem:[%s5355_s22 + $0x10] sm:$0xff] }
  0x37   : > { %3867 = vmatpush1.bf16.msra.mxu0 %v3866_v50 }
  0xb7   : > { %v722_v12 = vpop.xlane.xlu0 %721  ;;  %v728_v13 = vpop.xlane.xlu1 %727 }
  0xb8   : > { %v733_v14 = vmul.f32 0.020833334, %v722_v12  ;;  %v735_v15 = vmul.f32 0.020833334, %v728_v13 }
  0xba   : > { %v4571_v16 = vsub.f32 %v709_v4, %v733_v14  ;;  %v4573_v17 = vsub.f32 %v711_v5, %v735_v15 }
  0xbb   : > { %v725_v18 = vpop.xlane.xlu0 %724  ;;  %v731_v19 = vpop.xlane.xlu1 %730 }
  0xbc   : > { %v734_v20 = vmul.f32 0.020833334, %v725_v18  ;;  %v736_v21 = vmul.f32 0.020833334, %v731_v19  ;;  %v741_v22 = vmul.f32 %v4571_v16, %v4571_v16  ;;  %v743_v23 = vmul.f32 %v4573_v17, %v4573_v17 }
  0xbe   : > { %v738_v24 = vsub.f32 %v710_v6, %v734_v20  ;;  %v4579_v25 = vsub.f32 %v712_v9, %v736_v21  ;;  %v745_v26 = vsel %vm719_vm1, %v741_v22, 0.0  ;;  %v751_v27 = vsel %vm719_vm1, %v743_v23, 0.0 }
  0xbf   : > { %746 = vadd.xlane.f32.xlu0 %v745_v26 }
  0xc0   : > { %v742_v28 = vmul.f32 %v738_v24, %v738_v24  ;;  %v744_v29 = vmul.f32 %v4579_v25, %v4579_v25 }
  0xc2   : > { %v748_v30 = vsel %vm719_vm1, %v742_v28, 0.0  ;;  %v754_v31 = vsel %vm719_vm1, %v744_v29, 0.0 }
  0xc3   : > { %752 = vadd.xlane.f32.xlu0 %v751_v27  ;;  %749 = vadd.xlane.f32.xlu1 %v748_v30 }
  0xc7   : > { %755 = vadd.xlane.f32.xlu1 %v754_v31 }
 0x14c   : > { %v747_v51 = vpop.xlane.xlu0 %746 }
 0x14d   : > { %v757_v52 = vmul.f32 0.020833334, %v747_v51 }
 0x14f   : > { %v761_v53 = vadd.f32 1e-05, %v757_v52 }
 0x150   : > { %v750_v54 = vpop.xlane.xlu1 %749  ;;  %v753_v55 = vpop.xlane.xlu0 %752 }
 0x151   : > { %4212 = vrsqrt.f32 %v761_v53  ;;  %v758_v56 = vmul.f32 0.020833334, %v750_v54  ;;  %v759_v57 = vmul.f32 0.020833334, %v753_v55 }
 0x153   : > { %v762_v58 = vadd.f32 1e-05, %v758_v56  ;;  %v763_v59 = vadd.f32 1e-05, %v759_v57 }
 0x154   : > { %v756_v60 = vpop.xlane.xlu1 %755 }
 0x155   : > { %4214 = vrsqrt.f32 %v762_v58  ;;  %v760_v61 = vmul.f32 0.020833334, %v756_v60 }
 0x156   : > { %4216 = vrsqrt.f32 %v763_v59 }
 0x157   : > { %v764_v62 = vadd.f32 1e-05, %v760_v61 }
 0x159   : > { %4218 = vrsqrt.f32 %v764_v62 }
 0x15b   : > { %v4213_v63 = vpop.eup %4212 }
 0x15c   : > { %v769_v1 = vmul.f32 %v4213_v63, %v4571_v16 }
 0x15e   : > { %v779_v3 = vmul.f32 %v3430_v0, %v769_v1 }
 0x15f   : > { %v4215_v4 = vpop.eup %4214 }
 0x160   : > { %v4217_v5 = vpop.eup %4216  ;;  %v789_v6 = vadd.f32 %v3431_v2, %v779_v3  ;;  %v770_v7 = vmul.f32 %v4215_v4, %v738_v24 }
 0x161   : > { %v771_v8 = vmul.f32 %v4217_v5, %v4573_v17 }
 0x162   : > { %3432 = vmatmul.mubr.msk.f32.vlgmr.msra.gmra.mrb[0].mxu0 %vm719_vm1, %v789_v6  ;;  %v780_v9 = vmul.f32 %v3430_v0, %v770_v7 }
 0x163   : > { %v4219_v10 = vpop.eup %4218  ;;  %887 = vmatprep.mubr.f32.mxu0 %v4378_v48  ;;  %v781_v12 = vmul.f32 %v3430_v0, %v771_v8 }
 0x164   : > { %v790_v11 = vadd.f32 %v3431_v2, %v780_v9  ;;  %v772_v13 = vmul.f32 %v4219_v10, %v4579_v25 }
 0x165   : > { %v791_v14 = vadd.f32 %v3431_v2, %v781_v12 }
 0x166   : > { %3433 = vmatmul.mubr.msk.f32.gmra.mrb[2].mxu0 %vm719_vm1, %v790_v11  ;;  %v782_v15 = vmul.f32 %v3430_v0, %v772_v13 }
 0x167   : > { %893 = vmatprep.mubr.f32.mxu0 %v4378_v48 }
 0x168   : > { %v792_v16 = vadd.f32 %v3431_v2, %v782_v15 }
 0x16a   : > { %3434 = vmatmul.mubr.msk.f32.gmra.mrb[4].mxu0 %vm719_vm1, %v791_v14 }
 0x16b   : > { %899 = vmatprep.mubr.f32.mxu0 %v4378_v48 }
 0x16e   : > { %3435 = vmatmul.mubr.msk.f32.gmra.mrb[6].mxu0 %vm719_vm1, %v792_v16 }
 0x235   : > { %v4620_v17 = vpop.f32.mrb[0].mxu0 }
 0x236   : > { %v4622_v18 = vpop.f32.mrb[1].mxu0  ;;  %3660 = vmatprep.mubr.msk.f32.mxu1 %vm918_vm2, %v4620_v17 }
 0x239   : > { %v4626_v19 = vpop.f32.mrb[2].mxu0 }
 0x23a   : > { %v4628_v20 = vpop.f32.mrb[3].mxu0  ;;  %v4632_v21 = vpack.i.bf16 %v4626_v19, %v4620_v17 }
 0x23b   : > { %v4202_v22 = vpack.i.bf16 %v4628_v20, %v4622_v18  ;;  %v4638_v23 = vpack.c.bf16 %v4628_v20, %v4622_v18 }
 0x23c   : > { %4103 = vrot.lane.b32.xlu0 %v4632_v21, %s4379_s27 }
 0x23d   : > { %v4641_v24 = vpop.f32.mrb[4].mxu0 }
 0x23e   : > { %v4643_v25 = vpop.f32.mrb[5].mxu0 }
 0x241   : > { %v4645_v26 = vpop.f32.mrb[6].mxu0 }
 0x242   : > { %v4647_v27 = vpop.f32.mrb[7].mxu0  ;;  %v4651_v28 = vpack.i.bf16 %v4645_v26, %v4641_v24 }
 0x243   : > { %v4207_v29 = vpack.i.bf16 %v4647_v27, %v4643_v25  ;;  %v4657_v30 = vpack.c.bf16 %v4647_v27, %v4643_v25 }
 0x244   : > { %4108 = vrot.lane.b32.xlu1 %v4651_v28, %s4379_s27  ;;  %s4383_s27 = smov 120  }
 0x2ae   : > { %v4104_v31 = vpop.permute.xlu0 %4103 }
 0x2af   : > { %v4106_v32 = vunpack.i.h.bf16 %v4104_v31  ;;  %v4105_v33 = vunpack.i.l.bf16 %v4104_v31 }
 0x2b1   : > { %v3868_v35 = vpack.c.bf16 %v4106_v32, %v4105_v33 }
 0x2b3   : > { %3870 = vmatprep.subr.msk.bf16.mxu1 %vm4662_vm3, %v3868_v35 }
 0x2b4   : > { %3873 = vmatpush3.bf16.xpose.msk.msra.mxu1 %vm4662_vm3, %v3868_v35 }
 0x2b6   : > { %v4109_v36 = vpop.permute.xlu1 %4108 }
 0x2b7   : > { %v4111_v37 = vunpack.i.h.bf16 %v4109_v36  ;;  %v4110_v38 = vunpack.i.l.bf16 %v4109_v36 }
 0x2b9   : > { %v3874_v39 = vpack.c.bf16 %v4111_v37, %v4110_v38 }
 0x2bb   : > { %3876 = vmatprep.subr.msk.bf16.mxu1 %vm4662_vm3, %v3874_v39 }
 0x2bc   : > { %3879 = vmatpush3.bf16.xpose.msk.msra.mxu1 %vm4662_vm3, %v3874_v39 }
 0x2c3   : > { %3661 = vmatmul.mubr.msk.f32.vlgmr.msra.gmra.mrb[0].mxu1 %vm918_vm2, %v4626_v19 }
 0x2c4   : > { %3663 = vmatprep.mubr.msk.f32.mxu1 %vm918_vm2, %v4641_v24 }
 0x2c7   : > { %3664 = vmatmul.mubr.msk.f32.gmra.mrb[2].mxu1 %vm918_vm2, %v4645_v26 }
 0x396   : > { %v3662_v42 = vpop.f32.mrb[0].mxu1 }
 0x397   : > { %v1007_v43 = vadd.f32 %v3662_v42, %v4683_v40  ;;  %v1001_v44 = vpop.f32.mrb[1].mxu1 }
 0x398   : > { %v1002_v45 = vadd.f32 %v1001_v44, %v4688_v41 }
 0x399   : > { %v1024_v47 = vsel %vm1020_vm4, %v1007_v43, -inf }
 0x39a   : > { %1025 = vmax.xlane.f32.xlu0 %v1024_v47  ;;  %v3665_v50 = vpop.f32.mrb[2].mxu1  ;;  %v1021_v51 = vsel %vm1020_vm4, %v1002_v45, -inf }
 0x39b   : > { %v1017_v52 = vadd.f32 %v3665_v50, %v4695_v46  ;;  %v1011_v53 = vpop.f32.mrb[3].mxu1  ;;  %1022 = vmax.xlane.f32.xlu1 %v1021_v51 }
 0x39c   : > { %v1012_v54 = vadd.f32 %v1011_v53, %v4701_v49 }
 0x39d   : > { %v1030_v55 = vsel %vm1020_vm4, %v1017_v52, -inf }
 0x39e   : > { %v1027_v56 = vsel %vm1020_vm4, %v1012_v54, -inf }
 0x39f   : > { %1028 = vmax.xlane.f32.xlu0 %v1027_v56  ;;  %1031 = vmax.xlane.f32.xlu1 %v1030_v55 }
 0x427   : > { %v1026_v57 = vpop.xlane.xlu0 %1025 }
 0x428   : > { %v1034_v58 = vsub.f32 %v1007_v43, %v1026_v57  ;;  %v1023_v59 = vpop.xlane.xlu1 %1022 }
 0x429   : > { %v1033_v60 = vsub.f32 %v1002_v45, %v1023_v59 }
 0x42a   : > { %v1039_v61 = vmul.f32 1.442695, %v1034_v58 }
 0x42b   : > { %v1037_v62 = vmul.f32 1.442695, %v1033_v60 }
 0x42c   : > { %4220 = vpow2.f32 %v1039_v61  ;;  %v1029_v3 = vpop.xlane.xlu0 %1028  ;;  %v1032_v6 = vpop.xlane.xlu1 %1031 }
 0x42d   : > { %4222 = vpow2.f32 %v1037_v62  ;;  %v1035_v4 = vsub.f32 %v1012_v54, %v1029_v3  ;;  %v1036_v7 = vsub.f32 %v1017_v52, %v1032_v6 }
 0x42f   : > { %v1041_v5 = vmul.f32 1.442695, %v1035_v4  ;;  %v1043_v8 = vmul.f32 1.442695, %v1036_v7 }
 0x431   : > { %4224 = vpow2.f32 %v1041_v5 }
 0x432   : > { %4226 = vpow2.f32 %v1043_v8 }
 0x436   : > { %v4708_v63 = vpop.eup %4220 }
 0x437   : > { %v4223_v0 = vpop.eup %4222  ;;  %v1048_v1 = vsel %vm1020_vm4, %v4708_v63, 0.0 }
 0x438   : > { %1049 = vadd.xlane.f32.xlu1 %v1048_v1  ;;  %v1045_v2 = vsel %vm1020_vm4, %v4223_v0, 0.0 }
 0x439   : > { %1046 = vadd.xlane.f32.xlu0 %v1045_v2 }
 0x43b   : > { %v4719_v9 = vpop.eup %4224 }
 0x43c   : > { %v1051_v10 = vsel %vm1020_vm4, %v4719_v9, 0.0  ;;  %v4723_v11 = vpop.eup %4226 }
 0x43d   : > { %v1054_v12 = vsel %vm1020_vm4, %v4723_v11, 0.0 }
 0x449   : > { %4118 = vrot.lane.b32.xlu1 %v4651_v28, %s4380_s18 }
 0x44d   : > { %4123 = vrot.lane.b32.xlu1 %v4632_v21, %s4381_s13 }
 0x44f   : > { %4113 = vrot.lane.b32.xlu0 %v4632_v21, %s4380_s18 }
 0x451   : > { %4128 = vrot.lane.b32.xlu1 %v4651_v28, %s4381_s13  ;;  %s4392_s13 = smov 40  }
 0x46e   : > { %1052 = vadd.xlane.f32.xlu0 %v1051_v10 }
 0x475   : > { %1055 = vadd.xlane.f32.xlu1 %v1054_v12 }
 0x484   : > { %4133 = vrot.lane.b32.xlu0 %v4632_v21, %s4382_s2 }
 0x486   : > { %1174 = vrot.lane.b32.xlu1 %v4620_v17, %s4383_s27 }
 0x488   : > { %1176 = vrot.lane.b32.xlu0 %v4626_v19, %s4383_s27 }
 0x48a   : > { %4138 = vrot.lane.b32.xlu1 %v4651_v28, %s4382_s2  ;;  %s4393_s2 = smov 88  }
 0x48c   : > { %1178 = vrot.lane.b32.xlu0 %v4641_v24, %s4383_s27 }
 0x48e   : > { %1180 = vrot.lane.b32.xlu1 %v4645_v26, %s4383_s27 }
 0x490   : > { %1444 = vrot.lane.b32.xlu0 %v4620_v17, %s4384_s17 }
 0x492   : > { %1446 = vrot.lane.b32.xlu1 %v4626_v19, %s4384_s17 }
 0x494   : > { %1448 = vrot.lane.b32.xlu0 %v4641_v24, %s4384_s17 }
 0x496   : > { %1450 = vrot.lane.b32.xlu1 %v4645_v26, %s4384_s17 }
 0x4c5   : > { %v1050_v13 = vpop.xlane.xlu1 %1049 }
 0x4c6   : > { %v1047_v14 = vpop.xlane.xlu0 %1046 }
 0x4c7   : > { %4228 = vrcp.f32 %v1047_v14 }
 0x4c8   : > { %4230 = vrcp.f32 %v1050_v13 }
 0x4c9   : > { %v4119_v15 = vpop.permute.xlu1 %4118 }
 0x4ca   : > { %v4114_v16 = vpop.permute.xlu0 %4113  ;;  %v4121_v31 = vunpack.i.h.bf16 %v4119_v15  ;;  %v4120_v32 = vunpack.i.l.bf16 %v4119_v15 }
 0x4cb   : > { %v4116_v33 = vunpack.i.h.bf16 %v4114_v16  ;;  %v4115_v35 = vunpack.i.l.bf16 %v4114_v16 }
 0x4cc   : > { %v3884_v42 = vpack.c.bf16 %v4121_v31, %v4120_v32 }
 0x4cd   : > { %v4124_v36 = vpop.permute.xlu1 %4123  ;;  %v3880_v37 = vpack.c.bf16 %v4116_v33, %v4115_v35 }
 0x4ce   : > { %v4126_v38 = vunpack.i.h.bf16 %v4124_v36  ;;  %v4125_v39 = vunpack.i.l.bf16 %v4124_v36 }
 0x4cf   : > { %3881 = vmatprep.subr.bf16.mxu1 %v3880_v37 }
 0x4d0   : > { %3883 = vmatpush3.bf16.msra.mxu1 %v3880_v37  ;;  %v3888_v47 = vpack.c.bf16 %v4126_v38, %v4125_v39 }
 0x4d1   : > { %v4229_v43 = vpop.eup %4228  ;;  %3885 = vmatprep.subr.bf16.mxu1 %v3884_v42  ;;  %v4129_v51 = vpop.permute.xlu1 %4128 }
 0x4d2   : > { %v4231_v44 = vpop.eup %4230  ;;  %v1061_v45 = vmul.f32 %v4229_v43, %v4223_v0  ;;  %v4131_v52 = vunpack.i.h.bf16 %v4129_v51  ;;  %v4130_v53 = vunpack.i.l.bf16 %v4129_v51 }
 0x4d3   : > { %v1062_v50 = vmul.f32 %v4231_v44, %v4708_v63 }
 0x4d4   : > { %3887 = vmatpush3.bf16.msra.mxu1 %v3884_v42  ;;  %3674 = vmatprep.mubr.msk.f32.mxu1 %vm1020_vm4, %v1061_v45  ;;  %v3894_v54 = vpack.c.bf16 %v4131_v52, %v4130_v53 }
 0x4d5   : > { %3890 = vmatprep.subr.msk.bf16.mxu1 %vm4662_vm3, %v3888_v47 }
 0x4d7   : > { %3675 = vmatmul.mubr.msk.f32.vlgmr.msra.gmra.mrb[4].mxu1 %vm1020_vm4, %v1062_v50 }
 0x4dd   : > { %3893 = vmatpush3.bf16.xpose.msk.msra.mxu1 %vm4662_vm3, %v3888_v47 }
 0x4de   : > { %3896 = vmatprep.subr.msk.bf16.mxu1 %vm4662_vm3, %v3894_v54 }
 0x4e5   : > { %3899 = vmatpush3.bf16.xpose.msk.msra.mxu1 %vm4662_vm3, %v3894_v54 }
 0x4fb   : > { %v1053_v55 = vpop.xlane.xlu0 %1052 }
 0x4fc   : > { %4232 = vrcp.f32 %v1053_v55 }
 0x4ff   : > { %v4134_v56 = vpop.permute.xlu0 %4133 }
 0x500   : > { %v4136_v57 = vunpack.i.h.bf16 %v4134_v56  ;;  %v4135_v58 = vunpack.i.l.bf16 %v4134_v56 }
 0x502   : > { %v3908_v59 = vpack.c.bf16 %v4136_v57, %v4135_v58  ;;  %v1056_v60 = vpop.xlane.xlu1 %1055 }
 0x503   : > { %4234 = vrcp.f32 %v1056_v60  ;;  %v1177_v61 = vpop.permute.xlu0 %1176 }
 0x504   : > { %3910 = vmatprep.subr.msk.bf16.mxu0 %vm4662_vm3, %v3908_v59 }
 0x505   : > { %3913 = vmatpush3.bf16.xpose.msk.msra.mxu0 %vm4662_vm3, %v3908_v59 }
 0x506   : > { %v4233_v62 = vpop.eup %4232  ;;  %v1175_v63 = vpop.permute.xlu1 %1174 }
 0x507   : > { %v1179_v0 = vpop.permute.xlu0 %1178  ;;  %v1063_v1 = vmul.f32 %v4233_v62, %v4719_v9 }
 0x509   : > { %3677 = vmatprep.mubr.msk.f32.mxu1 %vm1020_vm4, %v1063_v1 }
 0x50a   : > { %v4139_v2 = vpop.permute.xlu1 %4138 }
 0x50b   : > { %v4141_v3 = vunpack.i.h.bf16 %v4139_v2  ;;  %v4140_v4 = vunpack.i.l.bf16 %v4139_v2  ;;  %v1445_v5 = vpop.permute.xlu0 %1444 }
 0x50c   : > { %3716 = vmatprep.mubr.msk.f32.mxu0 %vm918_vm2, %v1445_v5 }
 0x50d   : > { %v4235_v6 = vpop.eup %4234  ;;  %v3914_v7 = vpack.c.bf16 %v4141_v3, %v4140_v4 }
 0x50e   : > { %v1181_v8 = vpop.permute.xlu1 %1180  ;;  %v1064_v10 = vmul.f32 %v4235_v6, %v4723_v11 }
 0x50f   : > { %3916 = vmatprep.subr.msk.bf16.mxu0 %vm4662_vm3, %v3914_v7  ;;  %v1449_v12 = vpop.permute.xlu0 %1448 }
 0x510   : > { %3678 = vmatmul.mubr.msk.f32.gmra.mrb[6].mxu1 %vm1020_vm4, %v1064_v10  ;;  %3919 = vmatpush3.bf16.xpose.msk.msra.mxu0 %vm4662_vm3, %v3914_v7 }
 0x511   : > { %3688 = vmatprep.mubr.msk.f32.mxu1 %vm918_vm2, %v1175_v63 }
 0x512   : > { %v1447_v9 = vpop.permute.xlu1 %1446 }
 0x514   : > { %3689 = vmatmul.mubr.msk.f32.vlgmr.msra.gmra.mrb[8].mxu1 %vm918_vm2, %v1177_v61 }
 0x515   : > { %3691 = vmatprep.mubr.msk.f32.mxu1 %vm918_vm2, %v1179_v0 }
 0x516   : > { %v1451_v11 = vpop.permute.xlu1 %1450 }
 0x517   : > { %3717 = vmatmul.mubr.msk.f32.vlgmr.msra.gmra.mrb[8].mxu0 %vm918_vm2, %v1447_v9 }
 0x518   : > { %3692 = vmatmul.mubr.msk.f32.gmra.mrb[10].mxu1 %vm918_vm2, %v1181_v8  ;;  %3719 = vmatprep.mubr.msk.f32.mxu0 %vm918_vm2, %v1449_v12 }
 0x51b   : > { %3720 = vmatmul.mubr.msk.f32.gmra.mrb[10].mxu0 %vm918_vm2, %v1451_v11 }
 0x5aa   : > { %v4772_v13 = vpop.f32.mrb[4].mxu1 }
 0x5ab   : > { %v4774_v14 = vpop.f32.mrb[5].mxu1 }
 0x5e3   : > { %v4776_v15 = vpop.f32.mrb[6].mxu1 }
 0x5e4   : > { %v4778_v16 = vpop.f32.mrb[7].mxu1 }
 0x5e7   : > { %v3690_v31 = vpop.f32.mrb[8].mxu1 }
 0x5e8   : > { %v1278_v32 = vadd.f32 %v3690_v31, %v4683_v40  ;;  %v1272_v33 = vpop.f32.mrb[9].mxu1 }
 0x5e9   : > { %v4782_v35 = vadd.f32 %v1272_v33, %v4688_v41 }
 0x5ea   : > { %v3718_v36 = vpop.f32.mrb[8].mxu0  ;;  %v1294_v37 = vsel %vm1020_vm4, %v1278_v32, -inf }
 0x5eb   : > { %v1548_v38 = vadd.f32 %v3718_v36, %v4683_v40  ;;  %v1542_v39 = vpop.f32.mrb[9].mxu0  ;;  %1295 = vmax.xlane.f32.xlu1 %v1294_v37  ;;  %v3693_v42 = vpop.f32.mrb[10].mxu1  ;;  %v1291_v43 = vsel %vm1020_vm4, %v4782_v35, -inf }
 0x5ec   : > { %v1288_v44 = vadd.f32 %v3693_v42, %v4695_v46  ;;  %v1282_v45 = vpop.f32.mrb[11].mxu1  ;;  %1292 = vmax.xlane.f32.xlu0 %v1291_v43  ;;  %v1543_v56 = vadd.f32 %v1542_v39, %v4688_v41 }
 0x5ed   : > { %v1564_v47 = vsel %vm1020_vm4, %v1548_v38, -inf  ;;  %v1283_v52 = vadd.f32 %v1282_v45, %v4701_v49 }
 0x5ee   : > { %v3721_v50 = vpop.f32.mrb[10].mxu0  ;;  %v1300_v51 = vsel %vm1020_vm4, %v1288_v44, -inf  ;;  %v1561_v59 = vsel %vm1020_vm4, %v1543_v56, -inf }
 0x5ef   : > { %v1558_v53 = vadd.f32 %v3721_v50, %v4695_v46  ;;  %v1552_v54 = vpop.f32.mrb[11].mxu0  ;;  %1565 = vmax.xlane.f32.xlu1 %v1564_v47  ;;  %v1297_v57 = vsel %vm1020_vm4, %v1283_v52, -inf }
 0x5f0   : > { %1301 = vmax.xlane.f32.xlu0 %v1300_v51  ;;  %v1553_v58 = vadd.f32 %v1552_v54, %v4701_v49 }
 0x5f1   : > { %v1570_v55 = vsel %vm1020_vm4, %v1558_v53, -inf }
 0x5f2   : > { %v1567_v60 = vsel %vm1020_vm4, %v1553_v58, -inf }
 0x5f3   : > { %1571 = vmax.xlane.f32.xlu1 %v1570_v55 }
 0x5f4   : > { %1298 = vmax.xlane.f32.xlu0 %v1297_v57 }
 0x5f8   : > { %1562 = vmax.xlane.f32.xlu0 %v1561_v59 }
 0x5fc   : > { %1568 = vmax.xlane.f32.xlu0 %v1567_v60 }
 0x678   : > { %v1296_v61 = vpop.xlane.xlu1 %1295 }
 0x679   : > { %v1293_v62 = vpop.xlane.xlu0 %1292  ;;  %v1304_v31 = vsub.f32 %v1278_v32, %v1296_v61 }
 0x67a   : > { %v1303_v43 = vsub.f32 %v4782_v35, %v1293_v62 }
 0x67b   : > { %v1309_v37 = vmul.f32 1.442695, %v1304_v31 }
 0x67c   : > { %v1566_v63 = vpop.xlane.xlu1 %1565  ;;  %v1307_v47 = vmul.f32 1.442695, %v1303_v43 }
 0x67d   : > { %v1574_v0 = vsub.f32 %v1548_v38, %v1566_v63  ;;  %v1302_v1 = vpop.xlane.xlu0 %1301 }
 0x67e   : > { %v1306_v38 = vsub.f32 %v1288_v44, %v1302_v1 }
 0x67f   : > { %v1579_v2 = vmul.f32 1.442695, %v1574_v0 }
 0x680   : > { %v1572_v36 = vpop.xlane.xlu1 %1571  ;;  %v1313_v42 = vmul.f32 1.442695, %v1306_v38 }
 0x681   : > { %4236 = vpow2.f32 %v1579_v2  ;;  %v1299_v3 = vpop.xlane.xlu0 %1298  ;;  %v1576_v39 = vsub.f32 %v1558_v53, %v1572_v36 }
 0x682   : > { %v1305_v50 = vsub.f32 %v1283_v52, %v1299_v3 }
 0x683   : > { %v1583_v45 = vmul.f32 1.442695, %v1576_v39 }
 0x684   : > { %v1311_v54 = vmul.f32 1.442695, %v1305_v50 }
 0x685   : > { %v1563_v4 = vpop.xlane.xlu0 %1562 }
 0x686   : > { %v1573_v5 = vsub.f32 %v1543_v56, %v1563_v4 }
 0x688   : > { %v1577_v6 = vmul.f32 1.442695, %v1573_v5 }
 0x689   : > { %v1569_v12 = vpop.xlane.xlu0 %1568 }
 0x68a   : > { %4238 = vpow2.f32 %v1577_v6  ;;  %v1575_v11 = vsub.f32 %v1553_v58, %v1569_v12 }
 0x68b   : > { %v4799_v7 = vpop.eup %4236 }
 0x68c   : > { %v1588_v8 = vsel %vm1020_vm4, %v4799_v7, 0.0  ;;  %v1581_v33 = vmul.f32 1.442695, %v1575_v11 }
 0x68d   : > { %1589 = vadd.xlane.f32.xlu1 %v1588_v8 }
 0x68e   : > { %4240 = vpow2.f32 %v1581_v33 }
 0x68f   : > { %4242 = vpow2.f32 %v1309_v37 }
 0x690   : > { %4244 = vpow2.f32 %v1313_v42 }
 0x691   : > { %4246 = vpow2.f32 %v1583_v45 }
 0x692   : > { %4248 = vpow2.f32 %v1307_v47 }
 0x693   : > { %4250 = vpow2.f32 %v1311_v54 }
 0x694   : > { %v4803_v10 = vpop.eup %4238 }
 0x695   : > { %v1585_v9 = vsel %vm1020_vm4, %v4803_v10, 0.0 }
 0x696   : > { %1586 = vadd.xlane.f32.xlu0 %v1585_v9 }
 0x698   : > { %v4812_v51 = vpop.eup %4240 }
 0x699   : > { %v1591_v32 = vsel %vm1020_vm4, %v4812_v51, 0.0  ;;  %v4816_v55 = vpop.eup %4242 }
 0x69a   : > { %v1318_v44 = vsel %vm1020_vm4, %v4816_v55, 0.0  ;;  %v4820_v35 = vpop.eup %4244 }
 0x69b   : > { %v4822_v53 = vpop.eup %4246  ;;  %v1324_v52 = vsel %vm1020_vm4, %v4820_v35, 0.0 }
 0x69c   : > { %v1594_v56 = vsel %vm1020_vm4, %v4822_v53, 0.0  ;;  %v4828_v57 = vpop.eup %4248 }
 0x69d   : > { %v1315_v58 = vsel %vm1020_vm4, %v4828_v57, 0.0  ;;  %v4832_v59 = vpop.eup %4250 }
 0x69e   : > { %4148 = vrot.lane.b32.xlu1 %v4651_v28, %s4385_s15  ;;  %v1321_v60 = vsel %vm1020_vm4, %v4832_v59, 0.0 }
 0x6ac   : > { %4143 = vrot.lane.b32.xlu0 %v4632_v21, %s4385_s15 }
 0x6c2   : > { %1592 = vadd.xlane.f32.xlu1 %v1591_v32 }
 0x6c6   : > { %1319 = vadd.xlane.f32.xlu1 %v1318_v44 }
 0x6ca   : > { %1325 = vadd.xlane.f32.xlu1 %v1324_v52 }
 0x6cb   : > { %1595 = vadd.xlane.f32.xlu0 %v1594_v56 }
 0x6cf   : > { %1316 = vadd.xlane.f32.xlu0 %v1315_v58 }
 0x6d3   : > { %1322 = vadd.xlane.f32.xlu0 %v1321_v60 }
 0x6db   : > { %4158 = vrot.lane.b32.xlu1 %v4651_v28, %s4386_s24 }
 0x6df   : > { %4163 = vrot.lane.b32.xlu1 %v4632_v21, %s4387_s0 }
 0x6e3   : > { %4168 = vrot.lane.b32.xlu1 %v4651_v28, %s4387_s0 }
 0x6e7   : > { %1714 = vrot.lane.b32.xlu1 %v4620_v17, %s4388_s30 }
 0x6e9   : > { %4153 = vrot.lane.b32.xlu0 %v4632_v21, %s4386_s24 }
 0x6eb   : > { %4178 = vrot.lane.b32.xlu1 %v4651_v28, %s4389_s5 }
 0x6ed   : > { %4173 = vrot.lane.b32.xlu0 %v4632_v21, %s4389_s5 }
 0x6ef   : > { %1720 = vrot.lane.b32.xlu1 %v4645_v26, %s4388_s30 }
 0x6f1   : > { %1716 = vrot.lane.b32.xlu0 %v4626_v19, %s4388_s30 }
 0x6f3   : > { %1986 = vrot.lane.b32.xlu1 %v4626_v19, %s4390_s14 }
 0x6f5   : > { %1718 = vrot.lane.b32.xlu0 %v4641_v24, %s4388_s30 }
 0x6f7   : > { %1990 = vrot.lane.b32.xlu1 %v4645_v26, %s4390_s14 }
 0x6f9   : > { %1984 = vrot.lane.b32.xlu0 %v4620_v17, %s4390_s14 }
 0x6fd   : > { %1988 = vrot.lane.b32.xlu0 %v4641_v24, %s4390_s14 }
 0x71a   : > { %v1590_v61 = vpop.xlane.xlu1 %1589 }
 0x71e   : > { %v4149_v63 = vpop.permute.xlu1 %4148 }
 0x71f   : > { %v4151_v1 = vunpack.i.h.bf16 %v4149_v63  ;;  %v4150_v2 = vunpack.i.l.bf16 %v4149_v63 }
 0x721   : > { %v3904_v6 = vpack.c.bf16 %v4151_v1, %v4150_v2 }
 0x723   : > { %v1587_v62 = vpop.xlane.xlu0 %1586 }
 0x727   : > { %v4144_v0 = vpop.permute.xlu0 %4143 }
 0x728   : > { %v4146_v3 = vunpack.i.h.bf16 %v4144_v0  ;;  %v4145_v4 = vunpack.i.l.bf16 %v4144_v0 }
 0x72a   : > { %v3900_v5 = vpack.c.bf16 %v4146_v3, %v4145_v4 }
 0x72c   : > { %3901 = vmatprep.subr.bf16.mxu1 %v3900_v5 }
 0x72d   : > { %3903 = vmatpush3.bf16.msra.mxu1 %v3900_v5 }
 0x72e   : > { %3905 = vmatprep.subr.bf16.mxu1 %v3904_v6 }
 0x731   : > { %3907 = vmatpush3.bf16.msra.mxu1 %v3904_v6 }
 0x74f   : > { %v1593_v8 = vpop.xlane.xlu1 %1592 }
 0x753   : > { %v1320_v9 = vpop.xlane.xlu1 %1319 }
 0x754   : > { %4252 = vrcp.f32 %v1320_v9 }
 0x757   : > { %v1326_v12 = vpop.xlane.xlu1 %1325 }
 0x758   : > { %v1596_v11 = vpop.xlane.xlu0 %1595 }
 0x75b   : > { %v4159_v31 = vpop.permute.xlu1 %4158 }
 0x75c   : > { %v1317_v33 = vpop.xlane.xlu0 %1316  ;;  %v4161_v50 = vunpack.i.h.bf16 %v4159_v31  ;;  %v4160_v54 = vunpack.i.l.bf16 %v4159_v31 }
 0x75d   : > { %4254 = vrcp.f32 %v1317_v33 }
 0x75e   : > { %4256 = vrcp.f32 %v1587_v62  ;;  %v4253_v45 = vpop.eup %4252  ;;  %v3924_v1 = vpack.c.bf16 %v4161_v50, %v4160_v54 }
 0x75f   : > { %v4164_v36 = vpop.permute.xlu1 %4163  ;;  %4258 = vrcp.f32 %v1326_v12  ;;  %v1332_v60 = vmul.f32 %v4253_v45, %v4816_v55 }
 0x760   : > { %v1323_v37 = vpop.xlane.xlu0 %1322  ;;  %v4166_v2 = vunpack.i.h.bf16 %v4164_v36  ;;  %v4165_v3 = vunpack.i.l.bf16 %v4164_v36 }
 0x761   : > { %4260 = vrcp.f32 %v1323_v37 }
 0x762   : > { %4262 = vrcp.f32 %v1590_v61  ;;  %v3928_v36 = vpack.c.bf16 %v4166_v2, %v4165_v3 }
 0x763   : > { %v4852_v38 = vpop.permute.xlu1 %4168  ;;  %4264 = vrcp.f32 %v1593_v8 }
 0x764   : > { %v4154_v39 = vpop.permute.xlu0 %4153  ;;  %4266 = vrcp.f32 %v1596_v11 }
 0x765   : > { %v4156_v42 = vunpack.i.h.bf16 %v4154_v39  ;;  %v4155_v43 = vunpack.i.l.bf16 %v4154_v39 }
 0x767   : > { %v4255_v47 = vpop.eup %4254  ;;  %v3920_v32 = vpack.c.bf16 %v4156_v42, %v4155_v43  ;;  %v1715_v44 = vpop.permute.xlu1 %1714  ;;  %v4170_v42 = vunpack.i.l.bf16 %v4852_v38 }
 0x768   : > { %v4174_v52 = vpop.permute.xlu0 %4173  ;;  %v1331_v56 = vmul.f32 %v4255_v47, %v4828_v57  ;;  %v4257_v58 = vpop.eup %4256 }
 0x769   : > { %v4176_v62 = vunpack.i.h.bf16 %v4174_v52  ;;  %v4175_v63 = vunpack.i.l.bf16 %v4174_v52  ;;  %3921 = vmatprep.subr.bf16.mxu1 %v3920_v32  ;;  %v4259_v61 = vpop.eup %4258  ;;  %v1601_v31 = vmul.f32 %v4257_v58, %v4803_v10  ;;  %v4171_v10 = vunpack.i.h.bf16 %v4852_v38 }
 0x76a   : > { %3702 = vmatprep.mubr.msk.f32.mxu1 %vm1020_vm4, %v1331_v56  ;;  %v1334_v9 = vmul.f32 %v4259_v61, %v4820_v35 }
 0x76b   : > { %v4261_v0 = vpop.eup %4260  ;;  %v3948_v4 = vpack.c.bf16 %v4176_v62, %v4175_v63  ;;  %v4179_v5 = vpop.permute.xlu1 %4178  ;;  %3703 = vmatmul.mubr.msk.f32.vlgmr.msra.gmra.mrb[12].mxu1 %vm1020_vm4, %v1332_v60 }
 0x76c   : > { %v4181_v6 = vunpack.i.h.bf16 %v4179_v5  ;;  %v4180_v8 = vunpack.i.l.bf16 %v4179_v5  ;;  %3923 = vmatpush3.bf16.msra.mxu1 %v3920_v32  ;;  %v1717_v57 = vpop.permute.xlu0 %1716  ;;  %v1333_v55 = vmul.f32 %v4261_v0, %v4832_v59  ;;  %v4263_v12 = vpop.eup %4262 }
 0x76d   : > { %3925 = vmatprep.subr.bf16.mxu1 %v3924_v1  ;;  %3950 = vmatprep.subr.msk.bf16.mxu0 %vm4662_vm3, %v3948_v4  ;;  %v4265_v33 = vpop.eup %4264  ;;  %v1602_v37 = vmul.f32 %v4263_v12, %v4799_v7 }
 0x76e   : > { %v3954_v11 = vpack.c.bf16 %v4181_v6, %v4180_v8  ;;  %3705 = vmatprep.mubr.msk.f32.mxu1 %vm1020_vm4, %v1333_v55  ;;  %3953 = vmatpush3.bf16.xpose.msk.msra.mxu0 %vm4662_vm3, %v3948_v4  ;;  %v4267_v35 = vpop.eup %4266  ;;  %v1603_v39 = vmul.f32 %v4265_v33, %v4812_v51  ;;  %v3934_v51 = vpack.c.bf16 %v4171_v10, %v4170_v42 }
 0x76f   : > { %3706 = vmatmul.mubr.msk.f32.gmra.mrb[14].mxu1 %vm1020_vm4, %v1334_v9  ;;  %v1721_v43 = vpop.permute.xlu1 %1720  ;;  %v1604_v7 = vmul.f32 %v4267_v35, %v4822_v53 }
 0x770   : > { %3927 = vmatpush3.bf16.msra.mxu1 %v3924_v1  ;;  %v1719_v59 = vpop.permute.xlu0 %1718  ;;  %3730 = vmatprep.mubr.msk.f32.mxu1 %vm1020_vm4, %v1601_v31 }
 0x771   : > { %3930 = vmatprep.subr.msk.bf16.mxu1 %vm4662_vm3, %v3928_v36  ;;  %3956 = vmatprep.subr.msk.bf16.mxu0 %vm4662_vm3, %v3954_v11 }
 0x773   : > { %3731 = vmatmul.mubr.msk.f32.vlgmr.msra.gmra.mrb[16].mxu1 %vm1020_vm4, %v1602_v37  ;;  %v1987_v38 = vpop.permute.xlu1 %1986 }
 0x774   : > { %v1985_v45 = vpop.permute.xlu0 %1984  ;;  %3733 = vmatprep.mubr.msk.f32.mxu1 %vm1020_vm4, %v1603_v39 }
 0x775   : > { %3772 = vmatprep.mubr.msk.f32.mxu0 %vm918_vm2, %v1985_v45 }
 0x776   : > { %3959 = vmatpush3.bf16.xpose.msk.msra.mxu0 %vm4662_vm3, %v3954_v11 }
 0x777   : > { %3734 = vmatmul.mubr.msk.f32.gmra.mrb[18].mxu1 %vm1020_vm4, %v1604_v7  ;;  %v1991_v53 = vpop.permute.xlu1 %1990 }
 0x778   : > { %3744 = vmatprep.mubr.msk.f32.mxu1 %vm918_vm2, %v1715_v44  ;;  %v1989_v47 = vpop.permute.xlu0 %1988 }
 0x779   : > { %3933 = vmatpush3.bf16.xpose.msk.msra.mxu1 %vm4662_vm3, %v3928_v36 }
 0x77a   : > { %3936 = vmatprep.subr.msk.bf16.mxu1 %vm4662_vm3, %v3934_v51 }
 0x77d   : > { %3773 = vmatmul.mubr.msk.f32.vlgmr.msra.gmra.mrb[12].mxu0 %vm918_vm2, %v1987_v38 }
 0x77e   : > { %3775 = vmatprep.mubr.msk.f32.mxu0 %vm918_vm2, %v1989_v47 }
 0x781   : > { %3939 = vmatpush3.bf16.xpose.msk.msra.mxu1 %vm4662_vm3, %v3934_v51  ;;  %3776 = vmatmul.mubr.msk.f32.gmra.mrb[14].mxu0 %vm918_vm2, %v1991_v53 }
 0x788   : > { %3745 = vmatmul.mubr.msk.f32.vlgmr.msra.gmra.mrb[20].mxu1 %vm918_vm2, %v1717_v57 }
 0x789   : > { %3747 = vmatprep.mubr.msk.f32.mxu1 %vm918_vm2, %v1719_v59 }
 0x78c   : > { %3748 = vmatmul.mubr.msk.f32.gmra.mrb[22].mxu1 %vm918_vm2, %v1721_v43 }
 0x83e   : > { %v4896_v50 = vpop.f32.mrb[12].mxu1 }
 0x83f   : > { %v4898_v54 = vpop.f32.mrb[13].mxu1 }
 0x842   : > { %v4900_v32 = vpop.f32.mrb[14].mxu1 }
 0x843   : > { %v4902_v44 = vpop.f32.mrb[15].mxu1 }
 0x846   : > { %v4904_v52 = vpop.f32.mrb[16].mxu1 }
 0x847   : > { %v4906_v56 = vpop.f32.mrb[17].mxu1 }
 0x84a   : > { %v4908_v58 = vpop.f32.mrb[18].mxu1 }
 0x84b   : > { %v4910_v60 = vpop.f32.mrb[19].mxu1 }
 0x850   : > { %v3774_v62 = vpop.f32.mrb[12].mxu0 }
 0x851   : > { %v2082_v63 = vpop.f32.mrb[13].mxu0  ;;  %v2088_v5 = vadd.f32 %v3774_v62, %v4683_v40 }
 0x852   : > { %v2083_v36 = vadd.f32 %v2082_v63, %v4688_v41 }
 0x853   : > { %v2104_v11 = vsel %vm1020_vm4, %v2088_v5, -inf }
 0x854   : > { %v3777_v61 = vpop.f32.mrb[14].mxu0 }
 0x855   : > { %v2092_v0 = vpop.f32.mrb[15].mxu0  ;;  %v2098_v12 = vadd.f32 %v3777_v61, %v4695_v46 }
 0x856   : > { %v2093_v37 = vadd.f32 %v2092_v0, %v4701_v49 }
 0x858   : > { %v2107_v35 = vsel %vm1020_vm4, %v2093_v37, -inf }
 0x85b   : > { %v3746_v1 = vpop.f32.mrb[20].mxu1 }
 0x85c   : > { %v1818_v2 = vadd.f32 %v3746_v1, %v4683_v40  ;;  %v1812_v3 = vpop.f32.mrb[21].mxu1  ;;  %v2110_v40 = vsel %vm1020_vm4, %v2098_v12, -inf }
 0x85d   : > { %v1813_v4 = vadd.f32 %v1812_v3, %v4688_v41 }
 0x85e   : > { %v1834_v6 = vsel %vm1020_vm4, %v1818_v2, -inf }
 0x85f   : > { %1835 = vmax.xlane.f32.xlu1 %v1834_v6  ;;  %v3749_v8 = vpop.f32.mrb[22].mxu1  ;;  %v1831_v57 = vsel %vm1020_vm4, %v1813_v4, -inf }
 0x860   : > { %v1828_v55 = vadd.f32 %v3749_v8, %v4695_v46  ;;  %v1822_v9 = vpop.f32.mrb[23].mxu1  ;;  %1832 = vmax.xlane.f32.xlu0 %v1831_v57  ;;  %v2101_v46 = vsel %vm1020_vm4, %v2083_v36, -inf }
 0x861   : > { %v1823_v33 = vadd.f32 %v1822_v9, %v4701_v49 }
 0x862   : > { %v1840_v31 = vsel %vm1020_vm4, %v1828_v55, -inf }
 0x863   : > { %2105 = vmax.xlane.f32.xlu1 %v2104_v11  ;;  %v1837_v59 = vsel %vm1020_vm4, %v1823_v33, -inf }
 0x864   : > { %1841 = vmax.xlane.f32.xlu0 %v1840_v31 }
 0x867   : > { %2111 = vmax.xlane.f32.xlu1 %v2110_v40 }
 0x868   : > { %1838 = vmax.xlane.f32.xlu0 %v1837_v59 }
 0x86c   : > { %2102 = vmax.xlane.f32.xlu0 %v2101_v46 }
 0x870   : > { %2108 = vmax.xlane.f32.xlu0 %v2107_v35 }
 0x8ec   : > { %v1836_v39 = vpop.xlane.xlu1 %1835 }
 0x8ed   : > { %v1833_v10 = vpop.xlane.xlu0 %1832  ;;  %v1844_v42 = vsub.f32 %v1818_v2, %v1836_v39 }
 0x8ee   : > { %v1843_v57 = vsub.f32 %v1813_v4, %v1833_v10 }
 0x8ef   : > { %v1849_v51 = vmul.f32 1.442695, %v1844_v42 }
 0x8f0   : > { %v2106_v43 = vpop.xlane.xlu1 %2105  ;;  %v1847_v31 = vmul.f32 1.442695, %v1843_v57 }
 0x8f1   : > { %v2114_v45 = vsub.f32 %v2088_v5, %v2106_v43  ;;  %v1842_v7 = vpop.xlane.xlu0 %1841 }
 0x8f2   : > { %v1846_v6 = vsub.f32 %v1828_v55, %v1842_v7 }
 0x8f3   : > { %v2119_v41 = vmul.f32 1.442695, %v2114_v45 }
 0x8f4   : > { %v2112_v9 = vpop.xlane.xlu1 %2111  ;;  %v1853_v11 = vmul.f32 1.442695, %v1846_v6 }
 0x8f5   : > { %4268 = vpow2.f32 %v2119_v41  ;;  %v1839_v38 = vpop.xlane.xlu0 %1838  ;;  %v2116_v40 = vsub.f32 %v2098_v12, %v2112_v9 }
 0x8f6   : > { %4270 = vpow2.f32 %v1849_v51  ;;  %v1845_v59 = vsub.f32 %v1823_v33, %v1839_v38 }
 0x8f8   : > { %v1851_v46 = vmul.f32 1.442695, %v1845_v59 }
 0x8f9   : > { %v2103_v47 = vpop.xlane.xlu0 %2102 }
 0x8fa   : > { %v2113_v53 = vsub.f32 %v2083_v36, %v2103_v47  ;;  %v2123_v36 = vmul.f32 1.442695, %v2116_v40 }
 0x8fc   : > { %v2117_v49 = vmul.f32 1.442695, %v2113_v53 }
 0x8fd   : > { %v2109_v3 = vpop.xlane.xlu0 %2108 }
 0x8fe   : > { %4272 = vpow2.f32 %v2117_v49  ;;  %v2115_v5 = vsub.f32 %v2093_v37, %v2109_v3 }
 0x8ff   : > { %v4928_v62 = vpop.eup %4268 }
 0x900   : > { %v2128_v63 = vsel %vm1020_vm4, %v4928_v62, 0.0  ;;  %v4932_v61 = vpop.eup %4270  ;;  %v2121_v8 = vmul.f32 1.442695, %v2115_v5 }
 0x901   : > { %2129 = vadd.xlane.f32.xlu1 %v2128_v63  ;;  %v1858_v0 = vsel %vm1020_vm4, %v4932_v61, 0.0 }
 0x902   : > { %4274 = vpow2.f32 %v2121_v8 }
 0x903   : > { %4276 = vpow2.f32 %v1853_v11 }
 0x904   : > { %4278 = vpow2.f32 %v1847_v31 }
 0x905   : > { %1859 = vadd.xlane.f32.xlu1 %v1858_v0  ;;  %4280 = vpow2.f32 %v2123_v36 }
 0x906   : > { %4282 = vpow2.f32 %v1851_v46 }
 0x908   : > { %v4936_v1 = vpop.eup %4272 }
 0x909   : > { %v2125_v2 = vsel %vm1020_vm4, %v4936_v1, 0.0 }
 0x90a   : > { %2126 = vadd.xlane.f32.xlu0 %v2125_v2 }
 0x90c   : > { %v4944_v35 = vpop.eup %4274 }
 0x90d   : > { %v2131_v37 = vsel %vm1020_vm4, %v4944_v35, 0.0  ;;  %v4948_v55 = vpop.eup %4276 }
 0x90e   : > { %v4279_v4 = vpop.eup %4278  ;;  %v1864_v39 = vsel %vm1020_vm4, %v4948_v55, 0.0 }
 0x90f   : > { %v1855_v12 = vsel %vm1020_vm4, %v4279_v4, 0.0  ;;  %v4953_v10 = vpop.eup %4280 }
 0x910   : > { %v2134_v33 = vsel %vm1020_vm4, %v4953_v10, 0.0  ;;  %v4283_v42 = vpop.eup %4282 }
 0x911   : > { %v1861_v43 = vsel %vm1020_vm4, %v4283_v42, 0.0 }
 0x916   : > { %4188 = vrot.lane.b32.xlu1 %v4651_v28, %s4391_s20 }
 0x920   : > { %4183 = vrot.lane.b32.xlu0 %v4632_v21, %s4391_s20 }
 0x93a   : > { %2132 = vadd.xlane.f32.xlu1 %v2131_v37 }
 0x93e   : > { %1865 = vadd.xlane.f32.xlu1 %v1864_v39 }
 0x93f   : > { %1856 = vadd.xlane.f32.xlu0 %v1855_v12 }
 0x943   : > { %2135 = vadd.xlane.f32.xlu0 %v2134_v33 }
 0x947   : > { %1862 = vadd.xlane.f32.xlu0 %v1861_v43 }
 0x94f   : > { %4198 = vrot.lane.b32.xlu1 %v4651_v28, %s4392_s13 }
 0x953   : > { %2242 = vrot.lane.b32.xlu1 %v4620_v17, %s4393_s2 }
 0x957   : > { %2244 = vrot.lane.b32.xlu1 %v4626_v19, %s4393_s2 }
 0x95b   : > { %2248 = vrot.lane.b32.xlu1 %v4645_v26, %s4393_s2 }
 0x95d   : > { %4193 = vrot.lane.b32.xlu0 %v4632_v21, %s4392_s13 }
 0x961   : > { %2246 = vrot.lane.b32.xlu0 %v4641_v24, %s4393_s2 }
 0x98e   : > { %v2130_v45 = vpop.xlane.xlu1 %2129 }
 0x992   : > { %v1860_v7 = vpop.xlane.xlu1 %1859 }
 0x993   : > { %4284 = vrcp.f32 %v1860_v7 }
 0x996   : > { %v4189_v41 = vpop.permute.xlu1 %4188 }
 0x997   : > { %v2127_v51 = vpop.xlane.xlu0 %2126  ;;  %v4191_v47 = vunpack.i.h.bf16 %v4189_v41  ;;  %v4190_v53 = vunpack.i.l.bf16 %v4189_v41 }
 0x999   : > { %v3944_v17 = vpack.c.bf16 %v4191_v47, %v4190_v53 }
 0x99b   : > { %v4184_v38 = vpop.permute.xlu0 %4183 }
 0x99c   : > { %v4186_v28 = vunpack.i.h.bf16 %v4184_v38  ;;  %v4185_v49 = vunpack.i.l.bf16 %v4184_v38 }
 0x99d   : > { %v4285_v2 = vpop.eup %4284 }
 0x99e   : > { %v3940_v63 = vpack.c.bf16 %v4186_v28, %v4185_v49  ;;  %v1872_v8 = vmul.f32 %v4285_v2, %v4932_v61  ;;  %v4324_v49 = vld [vmem:[%s5355_s22 + $0x8] sm:$0xff] }
 0x9a0   : > { %3941 = vmatprep.subr.bf16.mxu1 %v3940_v63 }
 0x9a1   : > { %3943 = vmatpush3.bf16.msra.mxu1 %v3940_v63 }
 0x9a2   : > { %3945 = vmatprep.subr.bf16.mxu1 %v3944_v17 }
 0x9a5   : > { %3947 = vmatpush3.bf16.msra.mxu1 %v3944_v17 }
 0x9a6   : > { %3961 = vmatprep.subr.bf16.mxu1 %v4638_v23 }
 0x9c7   : > { %v2133_v19 = vpop.xlane.xlu1 %2132 }
 0x9cb   : > { %v1866_v26 = vpop.xlane.xlu1 %1865 }
 0x9cc   : > { %v1857_v21 = vpop.xlane.xlu0 %1856 }
 0x9cd   : > { %4286 = vrcp.f32 %v1857_v21 }
 0x9ce   : > { %4288 = vrcp.f32 %v2127_v51 }
 0x9cf   : > { %4290 = vrcp.f32 %v1866_v26  ;;  %v4199_v61 = vpop.permute.xlu1 %4198 }
 0x9d0   : > { %v2136_v24 = vpop.xlane.xlu0 %2135  ;;  %v4201_v39 = vunpack.i.h.bf16 %v4199_v61  ;;  %v4200_v12 = vunpack.i.l.bf16 %v4199_v61 }
 0x9d3   : > { %v2243_v43 = vpop.permute.xlu1 %2242 }
 0x9d4   : > { %v1863_v0 = vpop.xlane.xlu0 %1862 }
 0x9d5   : > { %4292 = vrcp.f32 %v1863_v0 }
 0x9d6   : > { %4294 = vrcp.f32 %v2130_v45 }
 0x9d7   : > { %v4287_v3 = vpop.eup %4286  ;;  %4296 = vrcp.f32 %v2133_v19  ;;  %v4325_v19 = vld [vmem:[%s5355_s22] sm:$0xff] }
 0x9d8   : > { %v4194_v5 = vpop.permute.xlu0 %4193  ;;  %v1871_v6 = vmul.f32 %v4287_v3, %v4279_v4  ;;  %4298 = vrcp.f32 %v2136_v24  ;;  %v4289_v11 = vpop.eup %4288  ;;  %v4326_v3 = vld [vmem:[%s5355_s22 + $0x10] sm:$0xff] }
 0x9d9   : > { %v4196_v57 = vunpack.i.h.bf16 %v4194_v5  ;;  %v4195_v9 = vunpack.i.l.bf16 %v4194_v5  ;;  %v4291_v31 = vpop.eup %4290 }
 0x9da   : > { %3758 = vmatprep.mubr.msk.f32.mxu1 %vm1020_vm4, %v1871_v6  ;;  %v1874_v46 = vmul.f32 %v4291_v31, %v4948_v55  ;;  %v3974_v55 = vpack.c.bf16 %v4201_v39, %v4200_v12  ;;  %v4327_v6 = vld [vmem:[%s5355_s22 + $0x18] sm:$0xff] }
 0x9db   : > { %3759 = vmatmul.mubr.msk.f32.vlgmr.msra.gmra.mrb[24].mxu1 %vm1020_vm4, %v1872_v8  ;;  %v3968_v36 = vpack.c.bf16 %v4196_v57, %v4195_v9 }
 0x9dc   : > { %3963 = vmatpush3.bf16.msra.mxu1 %v4638_v23  ;;  %v2141_v23 = vmul.f32 %v4289_v11, %v4936_v1 }
 0x9dd   : > { %3965 = vmatprep.subr.bf16.mxu1 %v4657_v30 }
 0x9df   : > { %v4293_v40 = vpop.eup %4292 }
 0x9e0   : > { %3967 = vmatpush3.bf16.msra.mxu1 %v4657_v30  ;;  %v1873_v59 = vmul.f32 %v4293_v40, %v4283_v42  ;;  %v4295_v37 = vpop.eup %4294 }
 0x9e1   : > { %3970 = vmatprep.subr.msk.bf16.mxu1 %vm4662_vm3, %v3968_v36  ;;  %v4297_v4 = vpop.eup %4296  ;;  %v2142_v30 = vmul.f32 %v4295_v37, %v4928_v62  ;;  %v2245_v62 = vpop.permute.xlu1 %2244 }
 0x9e2   : > { %3761 = vmatprep.mubr.msk.f32.mxu1 %vm1020_vm4, %v1873_v59  ;;  %v4299_v33 = vpop.eup %4298  ;;  %v2143_v42 = vmul.f32 %v4297_v4, %v4944_v35  ;;  %v2247_v35 = vpop.permute.xlu0 %2246 }
 0x9e3   : > { %3762 = vmatmul.mubr.msk.f32.gmra.mrb[26].mxu1 %vm1020_vm4, %v1874_v46  ;;  %v2144_v1 = vmul.f32 %v4299_v33, %v4953_v10 }
 0x9e4   : > { %3786 = vmatprep.mubr.msk.f32.mxu1 %vm1020_vm4, %v2141_v23 }
 0x9e5   : > { %v2249_v45 = vpop.permute.xlu1 %2248 }
 0x9e7   : > { %3787 = vmatmul.mubr.msk.f32.vlgmr.msra.gmra.mrb[28].mxu1 %vm1020_vm4, %v2142_v30 }
 0x9e8   : > { %3789 = vmatprep.mubr.msk.f32.mxu1 %vm1020_vm4, %v2143_v42 }
 0x9e9   : > { %3973 = vmatpush3.bf16.xpose.msk.msra.mxu1 %vm4662_vm3, %v3968_v36 }
 0x9ea   : > { %3976 = vmatprep.subr.msk.bf16.mxu1 %vm4662_vm3, %v3974_v55 }
 0x9eb   : > { %3790 = vmatmul.mubr.msk.f32.gmra.mrb[30].mxu1 %vm1020_vm4, %v2144_v1 }
 0x9ec   : > { %3800 = vmatprep.mubr.msk.f32.mxu1 %vm918_vm2, %v2243_v43 }
 0x9f1   : > { %3979 = vmatpush3.bf16.xpose.msk.msra.mxu1 %vm4662_vm3, %v3974_v55 }
 0x9f8   : > { %3801 = vmatmul.mubr.msk.f32.vlgmr.msra.gmra.mrb[32].mxu1 %vm918_vm2, %v2245_v62 }
 0x9f9   : > { %3803 = vmatprep.mubr.msk.f32.mxu1 %vm918_vm2, %v2247_v35 }
 0x9fc   : > { %3804 = vmatmul.mubr.msk.f32.gmra.mrb[34].mxu1 %vm918_vm2, %v2249_v45 }
 0x9fd   : > { %2907 = vmatprep.mubr.f32.mxu1 %v4378_v48 }
 0xaae   : > { %v4997_v10 = vpop.f32.mrb[24].mxu1 }
 0xaaf   : > { %v1965_v7 = vpop.f32.mrb[25].mxu1 }
 0xab6   : > { %v4999_v51 = vpop.f32.mrb[26].mxu1 }
 0xab7   : > { %v5001_v41 = vpop.f32.mrb[27].mxu1 }
 0xaba   : > { %v3788_v34 = vpop.f32.mrb[28].mxu1 }
 0xabb   : > { %v2223_v38 = vpop.f32.mrb[29].mxu1 }
 0xabe   : > { %v5003_v47 = vpop.f32.mrb[30].mxu1 }
 0xabf   : > { %v5005_v53 = vpop.f32.mrb[31].mxu1 }
 0xacb   : > { %v3802_v28 = vpop.f32.mrb[32].mxu1 }
 0xacc   : > { %v2346_v63 = vadd.f32 %v4324_v49, %v3802_v28  ;;  %v2340_v17 = vpop.f32.mrb[33].mxu1  ;;  %v2620_v28 = vld [vmem:[%s4521_s16 + $0x8] sm:$0xff]  ;;  %v2621_v49 = vld [vmem:[%s4521_s16 + $0x10] sm:$0xff] }
 0xacd   : > { %v2341_v21 = vadd.f32 %v4325_v19, %v2340_v17  ;;  %v2622_v17 = vld [vmem:[%s4521_s16 + $0x18] sm:$0xff] }
 0xace   : > { %v2362_v24 = vsel %vm1020_vm4, %v2346_v63, -inf  ;;  %v3992_v19 = vpack.c.bf16 %v2622_v17, %v2621_v49 }
 0xacf   : > { %2363 = vmax.xlane.f32.xlu1 %v2362_v24  ;;  %v3805_v26 = vpop.f32.mrb[34].mxu1  ;;  %v2359_v0 = vsel %vm1020_vm4, %v2341_v21, -inf  ;;  %v2624_v24 = vld [vmem:[%s4521_s16 + $0x28] sm:$0xff] }
 0xad0   : > { %v2350_v2 = vpop.f32.mrb[35].mxu1  ;;  %2360 = vmax.xlane.f32.xlu0 %v2359_v0  ;;  %v2356_v8 = vadd.f32 %v4327_v6, %v3805_v26 }
 0xad1   : > { %v2351_v5 = vadd.f32 %v4326_v3, %v2350_v2 }
 0xad2   : > { %v2368_v9 = vsel %vm1020_vm4, %v2356_v8, -inf }
 0xad3   : > { %v2365_v57 = vsel %vm1020_vm4, %v2351_v5, -inf }
 0xad4   : > { %2366 = vmax.xlane.f32.xlu0 %v2365_v57 }
 0xad8   : > { %2369 = vmax.xlane.f32.xlu0 %v2368_v9 }
 0xb5c   : > { %v2364_v11 = vpop.xlane.xlu1 %2363 }
 0xb5d   : > { %v2372_v31 = vsub.f32 %v2346_v63, %v2364_v11  ;;  %v2361_v40 = vpop.xlane.xlu0 %2360 }
 0xb5e   : > { %v2371_v36 = vsub.f32 %v2341_v21, %v2361_v40  ;;  %v2623_v21 = vld [vmem:[%s4521_s16 + $0x20] sm:$0xff] }
 0xb5f   : > { %v2377_v59 = vmul.f32 1.442695, %v2372_v31  ;;  %v3996_v26 = vpack.c.bf16 %v2624_v24, %v2623_v21  ;;  %v4331_v24 = vld [vmem:[#allocation2 + $0x18] sm:$0xff] }
 0xb60   : > { %v2375_v61 = vmul.f32 1.442695, %v2371_v36 }
 0xb61   : > { %4300 = vpow2.f32 %v2377_v59  ;;  %v2367_v46 = vpop.xlane.xlu0 %2366 }
 0xb62   : > { %4302 = vpow2.f32 %v2375_v61  ;;  %v2373_v37 = vsub.f32 %v2351_v5, %v2367_v46 }
 0xb64   : > { %v2379_v23 = vmul.f32 1.442695, %v2373_v37 }
 0xb65   : > { %v2370_v4 = vpop.xlane.xlu0 %2369 }
 0xb66   : > { %4304 = vpow2.f32 %v2379_v23  ;;  %v2374_v39 = vsub.f32 %v2356_v8, %v2370_v4 }
 0xb68   : > { %v2381_v12 = vmul.f32 1.442695, %v2374_v39 }
 0xb6a   : > { %4306 = vpow2.f32 %v2381_v12 }
 0xb6b   : > { %v4301_v30 = vpop.eup %4300 }
 0xb6c   : > { %v4303_v33 = vpop.eup %4302  ;;  %v2386_v42 = vsel %vm1020_vm4, %v4301_v30, 0.0 }
 0xb6d   : > { %2387 = vadd.xlane.f32.xlu1 %v2386_v42  ;;  %v2383_v55 = vsel %vm1020_vm4, %v4303_v33, 0.0 }
 0xb6e   : > { %2384 = vadd.xlane.f32.xlu0 %v2383_v55 }
 0xb70   : > { %v4305_v1 = vpop.eup %4304 }
 0xb71   : > { %v2389_v43 = vsel %vm1020_vm4, %v4305_v1, 0.0 }
 0xb72   : > { %2390 = vadd.xlane.f32.xlu0 %v2389_v43 }
 0xb74   : > { %v4307_v62 = vpop.eup %4306 }
 0xb75   : > { %v2392_v35 = vsel %vm1020_vm4, %v4307_v62, 0.0 }
 0xb76   : > { %2393 = vadd.xlane.f32.xlu1 %v2392_v35 }
 0xb87   : > { %4208 = vrot.lane.b32.xlu1 %v4207_v29, %s4383_s27 }
 0xb88   : > { %4203 = vrot.lane.b32.xlu0 %v4202_v22, %s4383_s27  ;;  %s5356_s27 = scalar_lea.vmem %s5319_s4, %s4499_s26 }
 0xb8b   : > { %2520 = vrot.lane.b32.xlu1 %v4898_v54, %s4391_s20 }
 0xb8c   : > { %2536 = vrot.lane.b32.xlu0 %v4906_v56, %s4386_s24 }
 0xb8f   : > { %2522 = vrot.lane.b32.xlu1 %v4896_v50, %s4391_s20 }
 0xb90   : > { %2552 = vrot.lane.b32.xlu0 %v1965_v7, %s4385_s15 }
 0xb93   : > { %2538 = vrot.lane.b32.xlu1 %v4904_v52, %s4386_s24 }
 0xb94   : > { %2568 = vrot.lane.b32.xlu0 %v2223_v38, %s4380_s18  ;;  %v2619_v38 = vld [vmem:[%s4521_s16] sm:$0xff] }
 0xb95   : > { %v3988_v63 = vpack.c.bf16 %v2620_v28, %v2619_v38 }
 0xb97   : > { %2554 = vrot.lane.b32.xlu1 %v4997_v10, %s4385_s15 }
 0xb98   : > { %2524 = vrot.lane.b32.xlu0 %v4902_v44, %s4391_s20 }
 0xb9b   : > { %2570 = vrot.lane.b32.xlu1 %v3788_v34, %s4380_s18 }
 0xb9c   : > { %2540 = vrot.lane.b32.xlu0 %v4910_v60, %s4386_s24 }
 0xb9f   : > { %2526 = vrot.lane.b32.xlu1 %v4900_v32, %s4391_s20 }
 0xba0   : > { %2556 = vrot.lane.b32.xlu0 %v5001_v41, %s4385_s15 }
 0xba3   : > { %2542 = vrot.lane.b32.xlu1 %v4908_v58, %s4386_s24  ;;  %s5358_s24 = sld [smem:[#allocation12_spill]] (!%p3524_p5) }
 0xba7   : > { %2558 = vrot.lane.b32.xlu1 %v4999_v51, %s4385_s15 }
 0xbfa   : > { %v2388_v20 = vpop.xlane.xlu1 %2387 }
 0xbfb   : > { %v2385_v18 = vpop.xlane.xlu0 %2384 }
 0xbfc   : > { %4308 = vrcp.f32 %v2385_v18 }
 0xbfd   : > { %4310 = vrcp.f32 %v2388_v20 }
 0xbff   : > { %v2391_v22 = vpop.xlane.xlu0 %2390 }
 0xc00   : > { %4312 = vrcp.f32 %v2391_v22 }
 0xc03   : > { %v2394_v25 = vpop.xlane.xlu1 %2393  ;;  %v4204_v27 = vpop.permute.xlu0 %4203 }
 0xc04   : > { %v4206_v29 = vunpack.i.h.bf16 %v4204_v27  ;;  %v4205_v50 = vunpack.i.l.bf16 %v4204_v27  ;;  %4314 = vrcp.f32 %v2394_v25 }
 0xc06   : > { %v4309_v54 = vpop.eup %4308  ;;  %v3980_v32 = vpack.c.bf16 %v4206_v29, %v4205_v50 }
 0xc07   : > { %v4209_v44 = vpop.permute.xlu1 %4208  ;;  %v2399_v52 = vmul.f32 %v4309_v54, %v4303_v33  ;;  %v4311_v45 = vpop.eup %4310 }
 0xc08   : > { %v4211_v56 = vunpack.i.h.bf16 %v4209_v44  ;;  %v4210_v58 = vunpack.i.l.bf16 %v4209_v44  ;;  %3981 = vmatprep.subr.bf16.mxu0 %v3980_v32  ;;  %v2400_v7 = vmul.f32 %v4311_v45, %v4301_v30  ;;  %v2537_v9 = vpop.permute.xlu0 %2536 }
 0xc09   : > { %3983 = vmatpush3.bf16.msra.mxu0 %v3980_v32  ;;  %3814 = vmatprep.mubr.msk.f32.mxu0 %vm1020_vm4, %v2399_v52 }
 0xc0a   : > { %v3984_v60 = vpack.c.bf16 %v4211_v56, %v4210_v58  ;;  %v4313_v10 = vpop.eup %4312 }
 0xc0b   : > { %v2401_v41 = vmul.f32 %v4313_v10, %v4305_v1  ;;  %v2521_v6 = vpop.permute.xlu1 %2520  ;;  %v4328_v10 = vld [vmem:[#allocation2 + $0x8] sm:$0xff] }
 0xc0c   : > { %3985 = vmatprep.subr.bf16.mxu0 %v3984_v60  ;;  %v2553_v31 = vpop.permute.xlu0 %2552  ;;  %v2596_v37 = vsel %vm918_vm2, %v4774_v14, %v2521_v6 }
 0xc0d   : > { %3987 = vmatpush3.bf16.msra.mxu0 %v3984_v60 }
 0xc0e   : > { %v4315_v51 = vpop.eup %4314  ;;  %3989 = vmatprep.subr.bf16.mxu0 %v3988_v63 }
 0xc0f   : > { %v2402_v34 = vmul.f32 %v4315_v51, %v4307_v62  ;;  %v2523_v8 = vpop.permute.xlu1 %2522  ;;  %v4329_v51 = vld [vmem:[#allocation2] sm:$0xff] }
 0xc10   : > { %3815 = vmatmul.mubr.msk.f32.vlgmr.msra.gmra.mrb[16].mxu0 %vm1020_vm4, %v2400_v7  ;;  %v2569_v36 = vpop.permute.xlu0 %2568  ;;  %v2597_v12 = vsel %vm918_vm2, %v4772_v13, %v2523_v8 }
 0xc11   : > { %3817 = vmatprep.mubr.msk.f32.mxu0 %vm1020_vm4, %v2401_v41  ;;  %3991 = vmatpush3.bf16.msra.mxu0 %v3988_v63 }
 0xc12   : > { %3993 = vmatprep.subr.bf16.mxu0 %v3992_v19 }
 0xc13   : > { %v2539_v57 = vpop.permute.xlu1 %2538 }
 0xc14   : > { %3818 = vmatmul.mubr.msk.f32.gmra.mrb[18].mxu0 %vm1020_vm4, %v2402_v34  ;;  %v2525_v61 = vpop.permute.xlu0 %2524  ;;  %v2602_v30 = vsel %vm2600_vm5, %v2597_v12, %v2539_v57 }
 0xc15   : > { %3995 = vmatpush3.bf16.msra.mxu0 %v3992_v19  ;;  %v2598_v18 = vsel %vm918_vm2, %v4778_v16, %v2525_v61  ;;  %v4330_v19 = vld [vmem:[#allocation2 + $0x10] sm:$0xff] }
 0xc16   : > { %3997 = vmatprep.subr.bf16.mxu0 %v3996_v26 }
 0xc17   : > { %v2555_v11 = vpop.permute.xlu1 %2554 }
 0xc18   : > { %v2607_v55 = vsel %vm2605_vm6, %v2602_v30, %v2555_v11  ;;  %v2808_v30 = vld [vmem:[%s4516_s23 + $0x8] sm:$0xff] }
 0xc19   : > { %3999 = vmatpush3.bf16.msra.mxu0 %v3996_v26 }
 0xc1b   : > { %v2571_v40 = vpop.permute.xlu1 %2570 }
 0xc1c   : > { %v2611_v1 = vsel %vm1020_vm4, %v2607_v55, %v2571_v40  ;;  %v2807_v55 = vld [vmem:[%s4516_s23] sm:$0xff] }
 0xc1f   : > { %v2527_v59 = vpop.permute.xlu1 %2526 }
 0xc20   : > { %v2599_v22 = vsel %vm918_vm2, %v4776_v15, %v2527_v59  ;;  %v3508_v15 = vld [vmem:[%s5356_s27] ss:$0 sm:$0xff] }
 0xc23   : > { %v2543_v46 = vpop.permute.xlu1 %2542 }
 0xc24   : > { %v2604_v27 = vsel %vm2600_vm5, %v2599_v22, %v2543_v46  ;;  %v2816_v22 = vld [vmem:[%s4516_s23 + $0x48] sm:$0xff] }
 0xc27   : > { %v2559_v23 = vpop.permute.xlu1 %2558 }
 0xc28   : > { %v2609_v50 = vsel %vm2605_vm6, %v2604_v27, %v2559_v23 }
 0xce3   : > { %v3816_v0 = vpop.f32.mrb[16].mxu0 }
 0xce4   : > { %2586 = vrot.lane.b32.xlu1 %v3816_v0, %s4392_s13  ;;  %v2497_v2 = vpop.f32.mrb[17].mxu0 }
 0xce5   : > { %2584 = vrot.lane.b32.xlu0 %v2497_v2, %s4392_s13 }
 0xce7   : > { %v3819_v3 = vpop.f32.mrb[18].mxu0 }
 0xce8   : > { %2574 = vrot.lane.b32.xlu1 %v5003_v47, %s4380_s18  ;;  %v2507_v5 = vpop.f32.mrb[19].mxu0  ;;  %v2541_v47 = vpop.permute.xlu0 %2540 }
 0xce9   : > { %2572 = vrot.lane.b32.xlu0 %v5005_v53, %s4380_s18  ;;  %v2601_v53 = vsel %vm2600_vm5, %v2596_v37, %v2537_v9  ;;  %v2603_v20 = vsel %vm2600_vm5, %v2598_v18, %v2541_v47  ;;  %v2813_v18 = vld [vmem:[%s4516_s23 + $0x30] sm:$0xff] }
 0xcea   : > { %v2606_v39 = vsel %vm2605_vm6, %v2601_v53, %v2553_v31 }
 0xceb   : > { %v2610_v42 = vsel %vm1020_vm4, %v2606_v39, %v2569_v36 }
 0xcec   : > { %2590 = vrot.lane.b32.xlu1 %v3819_v3, %s4392_s13  ;;  %v2557_v4 = vpop.permute.xlu0 %2556 }
 0xced   : > { %2588 = vrot.lane.b32.xlu0 %v2507_v5, %s4392_s13  ;;  %v2608_v25 = vsel %vm2605_vm6, %v2603_v20, %v2557_v4 }
 0xd56   : > { %v2587_v33 = vpop.permute.xlu1 %2586 }
 0xd57   : > { %v2585_v14 = vpop.permute.xlu0 %2584  ;;  %v2616_v62 = vsel %vm2614_vm7, %v2611_v1, %v2587_v33  ;;  %v2810_v33 = vld [vmem:[%s4516_s23 + $0x18] sm:$0xff] }
 0xd58   : > { %v2615_v43 = vsel %vm2614_vm7, %v2610_v42, %v2585_v14  ;;  %v4000_v42 = vpack.c.bf16 %v2810_v33, %v2808_v30  ;;  %v2809_v14 = vld [vmem:[%s4516_s23 + $0x10] sm:$0xff] }
 0xd59   : > { %3832 = vmatprep.mubr.msk.f32.mxu0 %vm719_vm1, %v2615_v43  ;;  %v4002_v1 = vpack.c.bf16 %v2809_v14, %v2807_v55  ;;  %v2812_v43 = vld [vmem:[%s4516_s23 + $0x28] sm:$0xff] }
 0xd5a   : > { %v2575_v35 = vpop.permute.xlu1 %2574  ;;  %3833 = vmatmul.mubr.msk.f32.vlgmr.msra.gmra.mrb[20].mxu0 %vm719_vm1, %v2616_v62  ;;  %4001 = vmatprep.subr.bf16.mxu1 %v4000_v42  ;;  %v2814_v62 = vld [vmem:[%s4516_s23 + $0x38] sm:$0xff] }
 0xd5b   : > { %v2573_v13 = vpop.permute.xlu0 %2572  ;;  %v2613_v44 = vsel %vm1020_vm4, %v2609_v50, %v2575_v35  ;;  %4003 = vmatpush1.bf16.msra.mxu1 %v4002_v1  ;;  %v4004_v35 = vpack.c.bf16 %v2814_v62, %v2812_v43  ;;  %v2817_v50 = vld [vmem:[%s4516_s23 + $0x50] sm:$0xff]  ;;  %v3513_v62 = vld [vmem:[%s692_s28] ss:$0 sm:$0xff]  ;;  %s5357_s28 = sld [smem:[#allocation14_spill]] (!%p3524_p5) }
 0xd5c   : > { %v2612_v54 = vsel %vm1020_vm4, %v2608_v25, %v2573_v13  ;;  %v2811_v13 = vld [vmem:[%s4516_s23 + $0x20] sm:$0xff]  ;;  %v2818_v25 = vld [vmem:[%s4516_s23 + $0x58] sm:$0xff] }
 0xd5d   : > { %v4006_v20 = vpack.c.bf16 %v2813_v18, %v2811_v13  ;;  %4005 = vmatprep.subr.bf16.mxu1 %v4004_v35  ;;  %v4008_v27 = vpack.c.bf16 %v2818_v25, %v2816_v22 }
 0xd5e   : > { %v2591_v29 = vpop.permute.xlu1 %2590 }
 0xd5f   : > { %v2589_v32 = vpop.permute.xlu0 %2588  ;;  %v2618_v16 = vsel %vm2614_vm7, %v2613_v44, %v2591_v29  ;;  %4007 = vmatpush1.bf16.msra.mxu1 %v4006_v20  ;;  %v2815_v29 = vld [vmem:[%s4516_s23 + $0x40] sm:$0xff]  ;;  %v2941_v44 = vld [vmem:[%s4544_s3 + $0x8] sm:$0xff] }
 0xd60   : > { %v2617_v52 = vsel %vm2614_vm7, %v2612_v54, %v2589_v32  ;;  %v4010_v54 = vpack.c.bf16 %v2817_v50, %v2815_v29  ;;  %4009 = vmatprep.subr.bf16.mxu1 %v4008_v27  ;;  %v2940_v32 = vld [vmem:[%s4544_s3] sm:$0xff] }
 0xd61   : > { %3835 = vmatprep.mubr.msk.f32.mxu0 %vm719_vm1, %v2617_v52  ;;  %v2942_v52 = vld [vmem:[%s4544_s3 + $0x10] sm:$0xff]  ;;  %v3514_v20 = vld [vmem:[%s695_s19] ss:$0 sm:$0xff]  ;;  %s5360_s19 = sld [smem:[#allocation15_spill]] (!%p3524_p5) }
 0xd62   : > { %3836 = vmatmul.mubr.msk.f32.gmra.mrb[22].mxu0 %vm719_vm1, %v2618_v16  ;;  %v4394_v16 = vmov 0.0|0.0  }
 0xd63   : > { %4011 = vmatpush1.bf16.msra.mxu1 %v4010_v54  ;;  %4012 = vmatprep.subr.bf16.mxu0 %v4394_v16 }
 0xe2d   : > { %v3834_v56 = vpop.f32.mrb[20].mxu0 }
 0xe2e   : > { %v2716_v58 = vadd.f32 %v3834_v56, %v3508_v15  ;;  %v2710_v60 = vpop.f32.mrb[21].mxu0  ;;  %v2943_v56 = vld [vmem:[%s4544_s3 + $0x18] sm:$0xff] }
 0xe2f   : > { %v2711_v45 = vadd.f32 %v3508_v15, %v2710_v60  ;;  %v2944_v60 = vld [vmem:[%s4544_s3 + $0x20] sm:$0xff] }
 0xe30   : > { %v5111_v7 = vadd.f32 %v4328_v10, %v2716_v58  ;;  %v4016_v58 = vpack.c.bf16 %v2943_v56, %v2942_v52  ;;  %v2961_v56 = vld [vmem:[%s4544_s3 + $0xa8] sm:$0xff] }
 0xe31   : > { %v5113_v41 = vadd.f32 %v4329_v51, %v2711_v45  ;;  %v2945_v45 = vld [vmem:[%s4544_s3 + $0x28] sm:$0xff]  ;;  %v2946_v51 = vld [vmem:[%s4544_s3 + $0x30] sm:$0xff] }
 0xe32   : > { %v2738_v34 = vsel %vm719_vm1, %v5111_v7, 0.0  ;;  %v4019_v10 = vpack.c.bf16 %v2945_v45, %v2944_v60  ;;  %v2962_v60 = vld [vmem:[%s4544_s3 + $0xb0] sm:$0xff]  ;;  %v2963_v45 = vld [vmem:[%s4544_s3 + $0xb8] sm:$0xff] }
 0xe33   : > { %2739 = vadd.xlane.f32.xlu1 %v2738_v34  ;;  %v2735_v38 = vsel %vm719_vm1, %v5113_v41, 0.0  ;;  %v2947_v34 = vld [vmem:[%s4544_s3 + $0x38] sm:$0xff] }
 0xe34   : > { %2736 = vadd.xlane.f32.xlu0 %v2735_v38  ;;  %v4022_v38 = vpack.c.bf16 %v2947_v34, %v2946_v51 }
 0xe35   : > { %v3837_v28 = vpop.f32.mrb[22].mxu0 }
 0xe36   : > { %v2720_v49 = vpop.f32.mrb[23].mxu0  ;;  %v2726_v63 = vadd.f32 %v3837_v28, %v3508_v15  ;;  %v2948_v28 = vld [vmem:[%s4544_s3 + $0x40] sm:$0xff] }
 0xe37   : > { %v2721_v17 = vadd.f32 %v3508_v15, %v2720_v49  ;;  %v4013_v15 = vpack.c.bf16 %v2941_v44, %v2940_v32  ;;  %v2949_v49 = vld [vmem:[%s4544_s3 + $0x48] sm:$0xff] }
 0xe38   : > { %v5121_v26 = vadd.f32 %v4331_v24, %v2726_v63  ;;  %v4025_v63 = vpack.c.bf16 %v2949_v49, %v2948_v28 }
 0xe39   : > { %v5119_v21 = vadd.f32 %v4330_v19, %v2721_v17  ;;  %4014 = vmatpush1.bf16.msra.mxu0 %v4013_v15  ;;  %v2950_v17 = vld [vmem:[%s4544_s3 + $0x50] sm:$0xff]  ;;  %v2951_v19 = vld [vmem:[%s4544_s3 + $0x58] sm:$0xff] }
 0xe3a   : > { %v2744_v2 = vsel %vm719_vm1, %v5121_v26, 0.0  ;;  %4015 = vmatprep.subr.bf16.mxu0 %v4394_v16  ;;  %v4028_v24 = vpack.c.bf16 %v2951_v19, %v2950_v17 }
 0xe3b   : > { %v2741_v0 = vsel %vm719_vm1, %v5119_v21, 0.0 }
 0xe3c   : > { %2742 = vadd.xlane.f32.xlu0 %v2741_v0  ;;  %v2952_v0 = vld [vmem:[%s4544_s3 + $0x60] sm:$0xff] }
 0xe3d   : > { %4017 = vmatpush1.bf16.msra.mxu0 %v4016_v58 }
 0xe3e   : > { %4018 = vmatprep.subr.bf16.mxu0 %v4394_v16 }
 0xe40   : > { %2745 = vadd.xlane.f32.xlu0 %v2744_v2  ;;  %v2953_v2 = vld [vmem:[%s4544_s3 + $0x68] sm:$0xff] }
 0xe41   : > { %4020 = vmatpush1.bf16.msra.mxu0 %v4019_v10  ;;  %v4046_v10 = vpack.c.bf16 %v2963_v45, %v2962_v60 }
 0xe42   : > { %4021 = vmatprep.subr.bf16.mxu0 %v4394_v16 }
 0xe45   : > { %4023 = vmatpush1.bf16.msra.mxu0 %v4022_v38  ;;  %v2819_v38 = vld [vmem:[%s4526_s29] sm:$0x3]  ;;  %s5359_s29 = sld [smem:[#allocation13_spill]] (!%p3524_p5) }
 0xe46   : > { %4024 = vmatprep.subr.bf16.mxu0 %v4394_v16 }
 0xe49   : > { %4026 = vmatpush1.bf16.msra.mxu0 %v4025_v63 }
 0xe4a   : > { %4027 = vmatprep.subr.bf16.mxu0 %v4394_v16 }
 0xe4d   : > { %4029 = vmatpush1.bf16.msra.mxu0 %v4028_v24 }
 0xe4e   : > { %4030 = vmatprep.subr.bf16.mxu0 %v4394_v16 }
 0xec0   : > { %v2740_v3 = vpop.xlane.xlu1 %2739 }
 0xec1   : > { %v2748_v5 = vmul.f32 0.020833334, %v2740_v3  ;;  %v2737_v6 = vpop.xlane.xlu0 %2736  ;;  %v4031_v3 = vpack.c.bf16 %v2953_v2, %v2952_v0 }
 0xec2   : > { %v2747_v8 = vmul.f32 0.020833334, %v2737_v6  ;;  %v2955_v6 = vld [vmem:[%s4544_s3 + $0x78] sm:$0xff] }
 0xec3   : > { %v5128_v57 = vsub.f32 %v5111_v7, %v2748_v5  ;;  %v2954_v5 = vld [vmem:[%s4544_s3 + $0x70] sm:$0xff]  ;;  %4032 = vmatpush1.bf16.msra.mxu0 %v4031_v3 }
 0xec4   : > { %v5131_v9 = vsub.f32 %v5113_v41, %v2747_v8  ;;  %v4034_v8 = vpack.c.bf16 %v2955_v6, %v2954_v5  ;;  %4033 = vmatprep.subr.bf16.mxu0 %v4394_v16 }
 0xec5   : > { %v2756_v11 = vmul.f32 %v5128_v57, %v5128_v57 }
 0xec6   : > { %v2755_v31 = vmul.f32 %v5131_v9, %v5131_v9 }
 0xec7   : > { %v2762_v40 = vsel %vm719_vm1, %v2756_v11, 0.0  ;;  %v2956_v11 = vld [vmem:[%s4544_s3 + $0x80] sm:$0xff]  ;;  %4035 = vmatpush1.bf16.msra.mxu0 %v4034_v8 }
 0xec8   : > { %2763 = vadd.xlane.f32.xlu1 %v2762_v40  ;;  %v2759_v36 = vsel %vm719_vm1, %v2755_v31, 0.0  ;;  %v2957_v31 = vld [vmem:[%s4544_s3 + $0x88] sm:$0xff]  ;;  %4036 = vmatprep.subr.bf16.mxu0 %v4394_v16 }
 0xec9   : > { %2760 = vadd.xlane.f32.xlu0 %v2759_v36  ;;  %v2743_v59 = vpop.xlane.xlu0 %2742  ;;  %v4037_v40 = vpack.c.bf16 %v2957_v31, %v2956_v11  ;;  %v2958_v36 = vld [vmem:[%s4544_s3 + $0x90] sm:$0xff] }
 0xeca   : > { %v2749_v61 = vmul.f32 0.020833334, %v2743_v59  ;;  %v2959_v59 = vld [vmem:[%s4544_s3 + $0x98] sm:$0xff] }
 0xecb   : > { %4038 = vmatpush1.bf16.msra.mxu0 %v4037_v40 }
 0xecc   : > { %v5140_v46 = vsub.f32 %v5119_v21, %v2749_v61  ;;  %v4040_v61 = vpack.c.bf16 %v2959_v59, %v2958_v36  ;;  %4039 = vmatprep.subr.bf16.mxu0 %v4394_v16 }
 0xecd   : > { %v2746_v47 = vpop.xlane.xlu0 %2745 }
 0xece   : > { %v2750_v37 = vmul.f32 0.020833334, %v2746_v47  ;;  %v2757_v53 = vmul.f32 %v5140_v46, %v5140_v46 }
 0xecf   : > { %4041 = vmatpush1.bf16.msra.mxu0 %v4040_v61 }
 0xed0   : > { %v5145_v23 = vsub.f32 %v5121_v26, %v2750_v37  ;;  %v2765_v4 = vsel %vm719_vm1, %v2757_v53, 0.0  ;;  %4042 = vmatprep.subr.bf16.mxu0 %v4394_v16 }
 0xed1   : > { %2766 = vadd.xlane.f32.xlu0 %v2765_v4 }
 0xed2   : > { %v2758_v39 = vmul.f32 %v5145_v23, %v5145_v23 }
 0xed4   : > { %v2768_v12 = vsel %vm719_vm1, %v2758_v39, 0.0 }
 0xed5   : > { %2769 = vadd.xlane.f32.xlu1 %v2768_v12 }
 0xf55   : > { %v2764_v47 = vpop.xlane.xlu1 %2763 }
 0xf56   : > { %v2772_v37 = vmul.f32 0.020833334, %v2764_v47  ;;  %v2761_v53 = vpop.xlane.xlu0 %2760 }
 0xf57   : > { %v2771_v4 = vmul.f32 0.020833334, %v2761_v53 }
 0xf58   : > { %v2776_v39 = vadd.f32 1e-05, %v2772_v37 }
 0xf59   : > { %v2775_v12 = vadd.f32 1e-05, %v2771_v4 }
 0xf5a   : > { %4316 = vrsqrt.f32 %v2776_v39 }
 0xf5b   : > { %4318 = vrsqrt.f32 %v2775_v12 }
 0xf5e   : > { %v2767_v30 = vpop.xlane.xlu0 %2766 }
 0xf5f   : > { %v2773_v33 = vmul.f32 0.020833334, %v2767_v30 }
 0xf61   : > { %v2777_v42 = vadd.f32 1e-05, %v2773_v33  ;;  %v3519_v33 = vld [vmem:[%s683_s1] ss:$0 sm:$0xff] }
 0xf62   : > { %v2770_v55 = vpop.xlane.xlu1 %2769 }
 0xf63   : > { %4320 = vrsqrt.f32 %v2777_v42  ;;  %v2774_v14 = vmul.f32 0.020833334, %v2770_v55 }
 0xf64   : > { %v4317_v1 = vpop.eup %4316 }
 0xf65   : > { %v4319_v43 = vpop.eup %4318  ;;  %v2778_v35 = vadd.f32 1e-05, %v2774_v14  ;;  %v2784_v18 = vmul.f32 %v4317_v1, %v5128_v57 }
 0xf66   : > { %v2783_v13 = vmul.f32 %v4319_v43, %v5131_v9 }
 0xf67   : > { %4322 = vrsqrt.f32 %v2778_v35  ;;  %v2794_v27 = vmul.f32 %v3513_v62, %v2784_v18 }
 0xf68   : > { %v2793_v22 = vmul.f32 %v3513_v62, %v2783_v13 }
 0xf69   : > { %v2804_v50 = vadd.f32 %v3514_v20, %v2794_v27 }
 0xf6a   : > { %v2803_v25 = vadd.f32 %v3514_v20, %v2793_v22 }
 0xf6c   : > { %3515 = vmatmul.mubr.msk.f32.vlgmr.msra.gmra.mrb[36].mxu1 %vm719_vm1, %v2803_v25 }
 0xf6d   : > { %v4321_v29 = vpop.eup %4320  ;;  %2913 = vmatprep.mubr.f32.mxu1 %v4378_v48 }
 0xf6e   : > { %v2785_v9 = vmul.f32 %v4321_v29, %v5140_v46  ;;  %v2960_v46 = vld [vmem:[%s4544_s3 + $0xa0] sm:$0xff] }
 0xf6f   : > { %v4043_v58 = vpack.c.bf16 %v2961_v56, %v2960_v46 }
 0xf70   : > { %3516 = vmatmul.mubr.msk.f32.gmra.mrb[38].mxu1 %vm719_vm1, %v2804_v50  ;;  %v2795_v57 = vmul.f32 %v3513_v62, %v2785_v9 }
 0xf71   : > { %v4323_v54 = vpop.eup %4322  ;;  %2919 = vmatprep.mubr.f32.mxu1 %v4378_v48  ;;  %4044 = vmatpush1.bf16.msra.mxu0 %v4043_v58 }
 0xf72   : > { %v2805_v32 = vadd.f32 %v3514_v20, %v2795_v57  ;;  %v2786_v44 = vmul.f32 %v4323_v54, %v5145_v23  ;;  %4045 = vmatprep.subr.bf16.mxu0 %v4394_v16  ;;  %v2821_v23 = vlaneseq }
 0xf74   : > { %3517 = vmatmul.mubr.msk.f32.gmra.mrb[40].mxu1 %vm719_vm1, %v2805_v32  ;;  %v2796_v52 = vmul.f32 %v3513_v62, %v2786_v44  ;;  %v2822_v51 = vshrl.u32 %v2821_v23, 7 }
 0xf75   : > { %2925 = vmatprep.mubr.f32.mxu1 %v4378_v48  ;;  %4047 = vmatpush1.bf16.msra.mxu0 %v4046_v10 }
 0xf76   : > { %v2806_v15 = vadd.f32 %v3514_v20, %v2796_v52  ;;  %v2823_v34 = vsub.s32 0, %v2822_v51  ;;  %v2827_v28 = vsub.s32 1, %v2822_v51 }
 0xf78   : > { %3518 = vmatmul.mubr.msk.f32.gmra.mrb[42].mxu1 %vm719_vm1, %v2806_v15  ;;  %v2824_v49 = vrot.slane %v2819_v38, %v2823_v34  ;;  %v2828_v48 = vrot.slane %v2819_v38, %v2827_v28 }
0x103f   : > { %v2909_v63 = vpop.f32.mrb[36].mxu1 }
0x1040   : > { %v2910_v17 = vadd.f32 %v2909_v63, %v2824_v49  ;;  %v2911_v19 = vpop.f32.mrb[37].mxu1 }
0x1041   : > { %v2912_v24 = vadd.f32 %v2911_v19, %v2828_v48  ;;  %v3156_v19 = vld [vmem:[%s5357_s28 + $0x8] sm:$0xff] (!%p3524_p5) }
0x1042   : > { %v2932_v3 = vmax.f32 %v2910_v17, 0.0  ;;  %v3155_v17 = vld [vmem:[%s5357_s28] sm:$0xff] (!%p3524_p5) }
0x1043   : > { %v2933_v0 = vmax.f32 %v2912_v24, 0.0  ;;  %v2915_v2 = vpop.f32.mrb[38].mxu1  ;;  %v4048_v24 = vpack.c.bf16 (!%p3524_p5), %v3156_v19, %v3155_v17 }
0x1044   : > { %v2916_v16 = vadd.f32 %v2915_v2, %v2824_v49  ;;  %v2917_v5 = vpop.f32.mrb[39].mxu1  ;;  %v3158_v2 = vld [vmem:[%s5357_s28 + $0x18] sm:$0xff] (!%p3524_p5) }
0x1045   : > { %v2918_v6 = vadd.f32 %v2917_v5, %v2828_v48  ;;  %3520 = vmatprep.mubr.msk.f32.mxu0 %vm2971_vm8, %v2933_v0  ;;  %v3157_v0 = vld [vmem:[%s5357_s28 + $0x10] sm:$0xff] (!%p3524_p5)  ;;  %v3160_v5 = vld [vmem:[%s5357_s28 + $0x28] sm:$0xff] (!%p3524_p5)  ;;  %4049 = vmatprep.subr.bf16.mxu0 (!%p3524_p5), %v4048_v24 }
0x1046   : > { %3049 = vmatmul.mubr.f32.vlgmr.msra.gmra.mrb[24].mxu0 %v2932_v3  ;;  %v2934_v31 = vmax.f32 %v2916_v16, 0.0  ;;  %v4052_v3 = vpack.c.bf16 (!%p3524_p5), %v3158_v2, %v3157_v0  ;;  %v3159_v16 = vld [vmem:[%s5357_s28 + $0x20] sm:$0xff] (!%p3524_p5)  ;;  %4060 = vmatprep.subr.bf16.mxu1 (!%p3524_p5), %v4048_v24 }
0x1047   : > { %v2935_v8 = vmax.f32 %v2918_v6, 0.0  ;;  %v2921_v11 = vpop.f32.mrb[40].mxu1  ;;  %4051 = vmatpush3.bf16.msra.mxu0 (!%p3524_p5), %v4048_v24  ;;  %4063 = vmatpush3.bf16.msra.mxu1 (!%p3524_p5), %v4048_v24  ;;  %v4056_v6 = vpack.c.bf16 (!%p3524_p5), %v3160_v5, %v3159_v16 }
0x1048   : > { %v2922_v40 = vadd.f32 %v2921_v11, %v2824_v49  ;;  %v2923_v36 = vpop.f32.mrb[41].mxu1  ;;  %4053 = vmatprep.subr.bf16.mxu0 (!%p3524_p5), %v4052_v3  ;;  %4061 = vmatprep.subr.bf16.mxu1 (!%p3524_p5), %v4052_v3 }
0x1049   : > { %v2924_v59 = vadd.f32 %v2923_v36, %v2828_v48  ;;  %3521 = vmatprep.mubr.msk.f32.mxu0 %vm2971_vm8, %v2935_v8 }
0x104a   : > { %3054 = vmatmul.mubr.f32.gmra.mrb[26].mxu0 %v2934_v31  ;;  %v2936_v37 = vmax.f32 %v2922_v40, 0.0 }
0x104b   : > { %v2937_v61 = vmax.f32 %v2924_v59, 0.0  ;;  %v2927_v47 = vpop.f32.mrb[42].mxu1  ;;  %4055 = vmatpush3.bf16.msra.mxu0 (!%p3524_p5), %v4052_v3  ;;  %4064 = vmatpush3.bf16.msra.mxu1 (!%p3524_p5), %v4052_v3 }
0x104c   : > { %v2928_v53 = vadd.f32 %v2927_v47, %v2824_v49  ;;  %v2929_v4 = vpop.f32.mrb[43].mxu1  ;;  %4057 = vmatprep.subr.bf16.mxu0 (!%p3524_p5), %v4056_v6  ;;  %4062 = vmatprep.subr.bf16.mxu1 (!%p3524_p5), %v4056_v6 }
0x104d   : > { %v2930_v39 = vadd.f32 %v2929_v4, %v2828_v48  ;;  %3522 = vmatprep.mubr.msk.f32.mxu0 %vm2971_vm8, %v2937_v61 }
0x104e   : > { %3059 = vmatmul.mubr.f32.gmra.mrb[28].mxu0 %v2936_v37  ;;  %v2938_v30 = vmax.f32 %v2928_v53, 0.0 }
0x104f   : > { %v2939_v12 = vmax.f32 %v2930_v39, 0.0  ;;  %4059 = vmatpush3.bf16.msra.mxu0 (!%p3524_p5), %v4056_v6  ;;  %4065 = vmatpush3.bf16.msra.mxu1 (!%p3524_p5), %v4056_v6 }
0x1051   : > { %3523 = vmatprep.mubr.msk.f32.mxu0 %vm2971_vm8, %v2939_v12 }
0x1052   : > { %3064 = vmatmul.mubr.f32.gmra.mrb[30].mxu0 %v2938_v30  ;;  %v3525_v30 = vld [vmem:[%s5358_s24] ss:$0 sm:$0xff] (!%p3524_p5) }
0x1119   : > { %v3050_v42 = vpop.f32.mrb[24].mxu0 }
0x111a   : > { %v3051_v55 = vadd.f32 %v3519_v33, %v3050_v42  ;;  %v3052_v14 = vpop.f32.mrb[25].mxu0  ;;  %v3526_v42 = vld [vmem:[%s5359_s29] ss:$0 sm:$0xff] (!%p3524_p5) }
0x111c   : > { %v3069_v1 = vadd.f32 %v3051_v55, %v5113_v41 }
0x111d   : > { %v3055_v43 = vpop.f32.mrb[26].mxu0 }
0x111e   : > { %3073 = vst.msk [vmem:[#allocation2] sm:$0xff] %vm719_vm1, %v3069_v1  ;;  %v3056_v62 = vadd.f32 %v3519_v33, %v3055_v43  ;;  %v3057_v35 = vpop.f32.mrb[27].mxu0 }
0x1120   : > { %v3070_v13 = vadd.f32 %v3056_v62, %v5111_v7  ;;  %v3083_v7 = vsel (!%p3524_p5), %vm719_vm1, %v3069_v1, 0.0 }
0x1121   : > { %v3060_v18 = vpop.f32.mrb[28].mxu0  ;;  %3084 = vadd.xlane.f32.xlu0 (!%p3524_p5), %v3083_v7 }
0x1122   : > { %3074 = vst.msk [vmem:[#allocation2 + $0x8] sm:$0xff] %vm719_vm1, %v3070_v13  ;;  %v3061_v20 = vadd.f32 %v3519_v33, %v3060_v18  ;;  %v3062_v22 = vpop.f32.mrb[29].mxu0  ;;  %v3086_v9 = vsel (!%p3524_p5), %vm719_vm1, %v3070_v13, 0.0 }
0x1123   : > { %3087 = vadd.xlane.f32.xlu1 (!%p3524_p5), %v3086_v9 }
0x1124   : > { %v3071_v25 = vadd.f32 %v3061_v20, %v5119_v21  ;;  %3080 = sbr.rel (%p3524_p5) target bundleno = 4923 (0x133b), region = 96 }
0x1125   : > { %v3065_v27 = vpop.f32.mrb[30].mxu0 }
0x1126   : > { %3075 = vst.msk [vmem:[#allocation2 + $0x10] sm:$0xff] %vm719_vm1, %v3071_v25  ;;  %v3066_v29 = vadd.f32 %v3519_v33, %v3065_v27  ;;  %v3067_v50 = vpop.f32.mrb[31].mxu0  ;;  %v3089_v21 = vsel (!%p3524_p5), %vm719_vm1, %v3071_v25, 0.0 }
0x1127   : > { %3090 = vadd.xlane.f32.xlu0 (!%p3524_p5), %v3089_v21 }
0x1128   : > { %v3072_v41 = vadd.f32 %v3066_v29, %v5121_v26 }
0x112a   : > { %3076 = vst.msk [vmem:[#allocation2 + $0x18] sm:$0xff] %vm719_vm1, %v3072_v41  ;;  %v3092_v57 = vsel (!%p3524_p5), %vm719_vm1, %v3072_v41, 0.0 }
0x112b   : > { %3093 = vadd.xlane.f32.xlu1 %v3092_v57 }
0x11ae   : > { %v3085_v54 = vpop.xlane.xlu0 %3084 }
0x11af   : > { %v3095_v26 = vmul.f32 0.020833334, %v3085_v54 }
0x11b0   : > { %v3088_v32 = vpop.xlane.xlu1 %3087 }
0x11b1   : > { %v3096_v44 = vmul.f32 0.020833334, %v3088_v32  ;;  %v3099_v52 = vsub.f32 %v3069_v1, %v3095_v26 }
0x11b3   : > { %v5243_v15 = vsub.f32 %v3070_v13, %v3096_v44  ;;  %v3103_v45 = vmul.f32 %v3099_v52, %v3099_v52 }
0x11b4   : > { %v3091_v46 = vpop.xlane.xlu0 %3090 }
0x11b5   : > { %v3097_v58 = vmul.f32 0.020833334, %v3091_v46  ;;  %v3104_v10 = vmul.f32 %v5243_v15, %v5243_v15  ;;  %v3107_v34 = vsel %vm719_vm1, %v3103_v45, 0.0 }
0x11b6   : > { %3108 = vadd.xlane.f32.xlu0 %v3107_v34 }
0x11b7   : > { %v3101_v23 = vsub.f32 %v3071_v25, %v3097_v58  ;;  %v3110_v38 = vsel %vm719_vm1, %v3104_v10, 0.0 }
0x11b8   : > { %v3094_v56 = vpop.xlane.xlu1 %3093 }
0x11b9   : > { %v3098_v60 = vmul.f32 0.020833334, %v3094_v56  ;;  %v3105_v28 = vmul.f32 %v3101_v23, %v3101_v23 }
0x11ba   : > { %3111 = vadd.xlane.f32.xlu0 %v3110_v38 }
0x11bb   : > { %v5247_v51 = vsub.f32 %v3072_v41, %v3098_v60  ;;  %v3113_v48 = vsel %vm719_vm1, %v3105_v28, 0.0  ;;  %v3527_v41 = vld [vmem:[%s5360_s19] ss:$0 sm:$0xff] }
0x11bc   : > { %3114 = vadd.xlane.f32.xlu1 %v3113_v48 }
0x11bd   : > { %v3106_v49 = vmul.f32 %v5247_v51, %v5247_v51 }
0x11bf   : > { %v3116_v63 = vsel %vm719_vm1, %v3106_v49, 0.0 }
0x11c0   : > { %3117 = vadd.xlane.f32.xlu1 %v3116_v63 }
0x1243   : > { %v3109_v8 = vpop.xlane.xlu0 %3108 }
0x1244   : > { %v3119_v11 = vmul.f32 0.020833334, %v3109_v8 }
0x1246   : > { %v3123_v31 = vadd.f32 1e-05, %v3119_v11 }
0x1247   : > { %v3112_v36 = vpop.xlane.xlu0 %3111 }
0x1248   : > { %4332 = vrsqrt.f32 %v3123_v31  ;;  %v3120_v61 = vmul.f32 0.020833334, %v3112_v36 }
0x1249   : > { %v3115_v40 = vpop.xlane.xlu1 %3114 }
0x124a   : > { %v3121_v59 = vmul.f32 0.020833334, %v3115_v40  ;;  %v3124_v37 = vadd.f32 1e-05, %v3120_v61 }
0x124c   : > { %v3125_v47 = vadd.f32 1e-05, %v3121_v59 }
0x124d   : > { %v3118_v53 = vpop.xlane.xlu1 %3117 }
0x124e   : > { %4334 = vrsqrt.f32 %v3125_v47  ;;  %v3122_v4 = vmul.f32 0.020833334, %v3118_v53 }
0x124f   : > { %4336 = vrsqrt.f32 %v3124_v37 }
0x1250   : > { %v3126_v39 = vadd.f32 1e-05, %v3122_v4 }
0x1252   : > { %4338 = vrsqrt.f32 %v3126_v39  ;;  %v4333_v12 = vpop.eup %4332 }
0x1253   : > { %v3131_v33 = vmul.f32 %v4333_v12, %v3099_v52 }
0x1255   : > { %v3141_v55 = vmul.f32 %v3525_v30, %v3131_v33 }
0x1257   : > { %v3151_v43 = vadd.f32 %v3526_v42, %v3141_v55 }
0x1258   : > { %v4335_v14 = vpop.eup %4334 }
0x1259   : > { %v4337_v1 = vpop.eup %4336  ;;  %v3133_v62 = vmul.f32 %v4335_v14, %v3101_v23  ;;  %3850 = vmatprep.mubr.msk.f32.mxu0 %vm719_vm1, %v3151_v43 }
0x125a   : > { %v3132_v35 = vmul.f32 %v4337_v1, %v5243_v15 }
0x125b   : > { %v3143_v13 = vmul.f32 %v3525_v30, %v3133_v62 }
0x125c   : > { %v4339_v18 = vpop.eup %4338  ;;  %v3142_v20 = vmul.f32 %v3525_v30, %v3132_v35 }
0x125d   : > { %v3153_v22 = vadd.f32 %v3526_v42, %v3143_v13  ;;  %v3134_v25 = vmul.f32 %v4339_v18, %v5247_v51 }
0x125e   : > { %v3152_v27 = vadd.f32 %v3526_v42, %v3142_v20 }
0x125f   : > { %3853 = vmatprep.mubr.msk.f32.mxu1 %vm719_vm1, %v3153_v22  ;;  %v3144_v29 = vmul.f32 %v3525_v30, %v3134_v25 }
0x1260   : > { %3851 = vmatmul.mubr.msk.f32.vlgmr.msra.gmra.mrb[0].mxu0 %vm719_vm1, %v3152_v27 }
0x1261   : > { %v3154_v50 = vadd.f32 %v3526_v42, %v3144_v29 }
0x1263   : > { %3854 = vmatmul.mubr.msk.f32.vlgmr.msra.gmra.mrb[0].mxu1 %vm719_vm1, %v3154_v50 }
0x1333   : > { %v3852_v7 = vpop.f32.mrb[0].mxu0 }
0x1334   : > { %v3252_v9 = vadd.f32 %v3852_v7, %v3527_v41  ;;  %v3246_v21 = vpop.f32.mrb[1].mxu0 }
0x1335   : > { %v3247_v57 = vadd.f32 %v3527_v41, %v3246_v21 }
0x1336   : > { %3267 = vst.msk [vmem:[#allocation3 + $0x8] sm:$0xff] %vm3265_vm9, %v3252_v9  ;;  %v3855_v54 = vpop.f32.mrb[0].mxu1 }
0x1337   : > { %3266 = vst.msk [vmem:[#allocation3] sm:$0xff] %vm3265_vm9, %v3247_v57  ;;  %v3262_v32 = vadd.f32 %v3855_v54, %v3527_v41  ;;  %v3256_v26 = vpop.f32.mrb[1].mxu1 }
0x1338   : > { %v3257_v44 = vadd.f32 %v3527_v41, %v3256_v26 }
0x1339   : > { %3269 = vst.msk [vmem:[#allocation3 + $0x18] sm:$0xff] %vm3265_vm9, %v3262_v32 }
0x133a   : > { %3268 = vst.msk [vmem:[#allocation3 + $0x10] sm:$0xff] %vm3265_vm9, %v3257_v44 }
0x133b PF: > { %p4073_p6 = scmp.eq.s32.totalorder %s4493_s25, 5  ;;  %s4395_s30 = smov [#allocation3]  }
0x133c   : > { %s3276_s5 = sshll.u32 %s4395_s30, 4  ;;  %s3277_s5 = int_to_ptr.vmem [resolvable:$true] %s3276_s5 }
0x133d   : > { %s4340_s14 = scalar_lea.vmem %s3277_s5, 512  ;;  %p4347_p10 = scmp.lt.s32.totalorder %s3277_s5, %s3277_s5 }
0x133e   : > { %p4341_p7 = scmp.ne.s32.totalorder %s3277_s5, %s4340_s14  ;;  %p4348_p11 = scmp.lt.s32.totalorder %s4340_s14, %s4340_s14 }
0x1340   : > { %p4342_p8 = pnand %p4341_p7, %p4073_p6  ;;  %p4349_p12 = por %p4348_p11, %p4347_p10 }
0x1342   : > { %p4343_p9 = pneg %p4342_p8 }
0x1344   : > { %p4350_p13 = pnand %p4349_p12, %p4343_p9 }
0x1346   : > { %4353 = shalt.err (!%p4350_p13)
}
0x1347   : > { %s5361_s0 = sld [smem:[#allocation16_spill]] }
0x134d   : > { %s4354_s16 = scalar_lea.hbm %s5361_s0, 512 }
0x134e   : > { %p4355_p0 = scmp.ne.s32.totalorder %s5361_s0, %s4354_s16  ;;  %p4360_p3 = scmp.lt.u32.totalorder %s4354_s16, %s5361_s0 }
0x1350   : > { %p4356_p1 = pnand %p4355_p0, %p4073_p6 }
0x1352   : > { %p4357_p2 = pneg %p4356_p1 }
0x1354   : > { %p4362_p4 = pnand %p4360_p3, %p4357_p2 }
0x1356   : > { %4365 = shalt.err (!%p4362_p4)
}
0x1357   : > { %s4396_s24 = smov 128  }
0x1358   : > { %4070 = dma.vmem_to_hbm [thread:$0]  (%p4073_p6), %s3277_s5, 512, %s5361_s0, [#allocation4], %s4396_s24, %s4396_s24, %s4391_s20  }
0x1359   : > { %4371 = dma.done.wait (%p4073_p6), [#allocation4], 512  }
0x135a   : > { %4373 = vsyncadd (%p4073_p6), [#allocation4], 4294966784 }
0x135b PF: > { %s5362_s29 = sld [smem:[#allocation6_spill]] }
0x1361   : > { %s28_s24 = sadd.s32 1, %s5362_s29  }
0x1362   : > { %p25_p5 = scmp.ge.s32.totalorder %s28_s24, 8  }
0x1364   :  { %27 = sbr.rel (!%p25_p5) target bundleno = 12 (0xc), region = 153 }
0x136b   :  { %3292 = vsyncpa [#allocation4], 1 }
0x136c   :  { %3294 = vsyncpa [#allocation4 + $0x1], 1 }

</bundles_post_ra>
